<compile_context>
chip_gen: v7x
topology: tpu7x:2x2x1
jax: 0.10.0
libtpu: 0.0.40
codegen_flags: <defaults>
</compile_context>

<pallas_src>
import functools
import math

import jax
import jax.numpy as jnp
from jax import lax
from jax.experimental import pallas as pl
from jax.experimental.pallas import tpu as pltpu


def _transformer_layer_kernel(
    x_ref,                       # (L, TB, C)  activations in the native (seq, batch, hidden) layout
    wq_ref, wk_ref, wv_ref,      # (C, C)  composed (outer linear @ MHA in-proj); q pre-scaled
    bq_ref, bk_ref, bv_ref,      # (1, C)  f32 in-proj biases (q bias pre-scaled)
    wo_ref, bo_ref,              # (C, C), (1, C)  MHA out-projection
    w1_ref, w2_ref,              # (C, C)  fc1 / fc2 (bias-free)
    o_ref,                       # (L, TB, C)  output
    attn_ref,                    # (L, C) VMEM scratch: per-head outputs land here (no concat)
    *, num_heads, head_dim, tb,
):
    f32 = jnp.float32
    cdt = wq_ref.dtype           # MXU operand dtype (bf16 in production, f32 for tight checking)

    # Load weights once per grid step; constant-index BlockSpecs keep them VMEM-resident.
    wq = wq_ref[...]
    wk = wk_ref[...]
    wv = wv_ref[...]
    wo = wo_ref[...]
    w1 = w1_ref[...]
    w2 = w2_ref[...]
    bq = bq_ref[...]
    bk = bk_ref[...]
    bv = bv_ref[...]
    bo = bo_ref[...]

    for bi in range(tb):                         # static loop over batch elements in this block
        x_f32 = x_ref[:, bi, :].astype(f32)      # (L, C): residual path kept in f32
        x_c = x_f32.astype(cdt)                  # MXU operand

        # Fused projections: x @ (Wq . Wiq) + bq  (1/sqrt(Dh) folded into q), f32 accumulate.
        qp = (jnp.dot(x_c, wq, preferred_element_type=f32) + bq).astype(cdt)
        kp = (jnp.dot(x_c, wk, preferred_element_type=f32) + bk).astype(cdt)
        vp = (jnp.dot(x_c, wv, preferred_element_type=f32) + bv).astype(cdt)

        # Per-head attention; each head writes directly into the (L, C) scratch slab.
        # TODO(synk): for head_dim < 128 or long sequences, group several heads per score
        # matmul and tile the query dim flash-style; unnecessary at these shapes.
        for h in range(num_heads):
            c0 = h * head_dim
            qh = qp[:, c0:c0 + head_dim]                       # (L, Dh)
            kh = kp[:, c0:c0 + head_dim]
            vh = vp[:, c0:c0 + head_dim]
            # scores = qh @ kh^T (contract head dim of both; avoids an explicit transpose)
            s = lax.dot_general(qh, kh, (((1,), (1,)), ((), ())),
                                preferred_element_type=f32)    # (L, L) f32
            s = s - jnp.max(s, axis=-1, keepdims=True)
            p = jnp.exp(s)                                     # unnormalized probs, f32
            denom = jnp.sum(p, axis=-1, keepdims=True)         # (L, 1)
            oh = jnp.dot(p.astype(cdt), vh, preferred_element_type=f32)   # (L, Dh)
            # Deferred softmax normalization on the small (L, Dh) result (EUP reciprocal).
            oh = oh * pl.reciprocal(denom, approx=True)
            attn_ref[:, c0:c0 + head_dim] = oh.astype(attn_ref.dtype)

        # One out-projection matmul over all heads + first residual.
        attn = jnp.dot(attn_ref[...], wo, preferred_element_type=f32) + bo
        x1 = attn + x_f32

        # Feed-forward: fc2(fc1(x1)) + x1 (both bias-free).
        h1 = jnp.dot(x1.astype(cdt), w1, preferred_element_type=f32)
        y = jnp.dot(h1.astype(cdt), w2, preferred_element_type=f32) + x1

        o_ref[:, bi, :] = y.astype(o_ref.dtype)


def transformer_layer_pallas(x_lnc, weights, biases, num_heads):
    """x_lnc: (seq, batch, hidden) — torch convention (batch_first=False). No HBM transposes."""
    wq, wk, wv, wo, w1, w2 = weights
    bq, bk, bv, bo = biases
    L, N, C = x_lnc.shape
    assert C % num_heads == 0
    head_dim = C // num_heads
    cdt = wq.dtype

    # Batch elements per grid step: the block's second-to-last dim must be a multiple of 8
    # or the full batch dim; packing several batches also gives the MXU a larger effective M
    # while keeping >1 grid step (megacore) when the batch is large.
    tb = 8 if (N % 8 == 0 and N > 8) else N
    grid = (N // tb,)

    # Constant-index weights/biases: single-buffered (they never re-DMA; the default double
    # buffering would double the resident footprint for nothing).
    w_spec = pl.BlockSpec((C, C), lambda b: (0, 0), pipeline_mode=pl.Buffered(1))
    b_spec = pl.BlockSpec((1, C), lambda b: (0, 0), pipeline_mode=pl.Buffered(1))
    x_spec = pl.BlockSpec((L, tb, C), lambda b: (0, b, 0))
    o_spec = pl.BlockSpec((L, tb, C), lambda b: (0, b, 0))

    w_item = jnp.dtype(cdt).itemsize
    x_item = jnp.dtype(x_lnc.dtype).itemsize
    # Rough working set: resident single-buffered weights + double-buffered I/O blocks +
    # scratch slab + live f32 intermediates + (L, L) score matrix; 2x safety margin,
    # clamped to [default scoped VMEM, v7x physical VMEM].
    est = (6 * C * C * w_item + 4 * C * 4
           + 2 * 2 * L * tb * C * x_item
           + L * C * w_item
           + 8 * L * C * 4
           + 2 * L * L * 4)
    vmem_limit = min(64 << 20, max(32 << 20, 2 * est))

    kern = functools.partial(_transformer_layer_kernel,
                             num_heads=num_heads, head_dim=head_dim, tb=tb)

    return pl.pallas_call(
        kern,
        out_shape=jax.ShapeDtypeStruct((L, N, C), x_lnc.dtype),
        grid=grid,
        in_specs=[
            x_spec,
            w_spec, w_spec, w_spec,          # composed q/k/v projection weights
            b_spec, b_spec, b_spec,          # in-proj biases
            w_spec, b_spec,                  # out-proj weight / bias
            w_spec, w_spec,                  # fc1 / fc2
        ],
        out_specs=o_spec,
        scratch_shapes=[pltpu.VMEM((L, C), cdt)],
        compiler_params=pltpu.CompilerParams(
            dimension_semantics=("parallel",),
            vmem_limit_bytes=vmem_limit),
    )(x_lnc, wq, wk, wv, bq, bk, bv, wo, bo, w1, w2)


class TransformerLayer:
    """Mirror of the PyTorch module.

    `params` holds the raw (uncomposed) weights stored as (in, out) — i.e. the transpose of
    torch's Linear.weight: (wq, wk, wv, wiq, wik, wiv, biq, bik, biv, wo, bo, w1, w2).
    At init the outer q/k/v Linears are composed with the MHA in-projection (in f32) and the
    1/sqrt(head_dim) scale is folded into the composed q weight/bias — a one-time parameter
    transform that removes three CxC matmuls per token from the kernel.
    """

    def __init__(self, c, num_heads, params, compute_dtype=jnp.bfloat16):
        assert c % num_heads == 0
        self.c = c
        self.num_heads = num_heads
        (wq, wk, wv, wiq, wik, wiv, biq, bik, biv, wo, bo, w1, w2) = params
        f32 = jnp.float32
        scale = 1.0 / math.sqrt(c // num_heads)
        wq_c = (wq.astype(f32) @ wiq.astype(f32)) * scale     # compose in f32, scale folded
        wk_c = wk.astype(f32) @ wik.astype(f32)
        wv_c = wv.astype(f32) @ wiv.astype(f32)
        self.weights = tuple(
            w.astype(compute_dtype)
            for w in (wq_c, wk_c, wv_c, wo.astype(f32), w1.astype(f32), w2.astype(f32)))
        # Biases stay f32: they add into the f32 matmul accumulators.
        self.biases = (biq.astype(f32) * scale, bik.astype(f32), biv.astype(f32), bo.astype(f32))

    def __call__(self, x):
        return transformer_layer_pallas(x, self.weights, self.biases, self.num_heads)


def _reference_transformer_layer(x, params, num_heads):
    """Pure-JAX reference of the same forward pass (uncomposed weights, f32, HIGHEST)."""
    (wq, wk, wv, wiq, wik, wiv, biq, bik, biv, wo, bo, w1, w2) = params
    L, N, C = x.shape
    dh = C // num_heads
    hp = lax.Precision.HIGHEST

    def proj(t, w):
        return jnp.einsum("lnc,cd->lnd", t, w, precision=hp)

    q0, k0, v0 = proj(x, wq), proj(x, wk), proj(x, wv)
    qp = proj(q0, wiq) + biq[0]
    kp = proj(k0, wik) + bik[0]
    vp = proj(v0, wiv) + biv[0]

    def split(t):  # (L, N, C) -> (N, H, L, dh)
        return jnp.transpose(t.reshape(L, N, num_heads, dh), (1, 2, 0, 3))

    qh = split(qp) * (1.0 / math.sqrt(dh))
    kh = split(kp)
    vh = split(vp)
    s = jnp.einsum("nhld,nhmd->nhlm", qh, kh, precision=hp)
    p = jax.nn.softmax(s, axis=-1)
    o = jnp.einsum("nhlm,nhmd->nhld", p, vh, precision=hp)
    o = jnp.transpose(o, (2, 0, 1, 3)).reshape(L, N, C)
    attn = proj(o, wo) + bo[0]
    x1 = attn + x
    y = proj(proj(x1, w1), w2) + x1
    return y


if __name__ == "__main__":
    seq, batch, hidden, num_heads = 8, 2, 32, 4

    key = jax.random.PRNGKey(0)
    ks = jax.random.split(key, 15)
    f32 = jnp.float32
    ws = 1.0 / math.sqrt(hidden)

    x = jax.random.normal(ks[0], (seq, batch, hidden), dtype=f32)

    def w(k):
        return jax.random.normal(k, (hidden, hidden), dtype=f32) * ws

    def b(k):
        return jax.random.normal(k, (1, hidden), dtype=f32) * 0.1

    params = (
        w(ks[1]), w(ks[2]), w(ks[3]),        # wq, wk, wv
        w(ks[4]), w(ks[5]), w(ks[6]),        # wiq, wik, wiv (MHA in-proj)
        b(ks[7]), b(ks[8]), b(ks[9]),        # biq, bik, biv
        w(ks[10]), b(ks[11]),                # wo, bo (MHA out-proj)
        w(ks[12]), w(ks[13]),                # fc1, fc2
    )

    ref = _reference_transformer_layer(x, params, num_heads)

    # 1) f32 compute path: tight check of the fused-kernel math (composition, attention,
    #    deferred normalization, residuals); only approx-reciprocal / MXU f32 rounding remain.
    layer_f32 = TransformerLayer(hidden, num_heads, params, compute_dtype=jnp.float32)
    out_f32 = jax.block_until_ready(layer_f32(x))
    assert out_f32.shape == ref.shape, (out_f32.shape, ref.shape)
    err32 = float(jnp.max(jnp.abs(out_f32 - ref)))
    assert jnp.allclose(out_f32, ref, atol=2e-2, rtol=2e-3), f"f32 mismatch, max abs err = {err32}"

    # 2) bf16 MXU-operand path (production setting): tolerance reflects bf16 operand rounding.
    layer_bf16 = TransformerLayer(hidden, num_heads, params, compute_dtype=jnp.bfloat16)
    out_bf16 = jax.block_until_ready(layer_bf16(x))
    assert out_bf16.shape == ref.shape, (out_bf16.shape, ref.shape)
    err16 = float(jnp.max(jnp.abs(out_bf16 - ref)))
    assert jnp.allclose(out_bf16, ref, atol=1.5e-1, rtol=5e-2), f"bf16 mismatch, max abs err = {err16}"

    print("KERNEL_OK")
</pallas_src>

<mosaic_0001>
module attributes {stable_mosaic.version = 11 : i64} {
  func.func @_transformer_layer_kernel(%arg0: i32, %arg1: memref<8x2x32xf32, #tpu.memory_space<vmem>>, %arg2: memref<32x32xf32, #tpu.memory_space<vmem>>, %arg3: memref<32x32xf32, #tpu.memory_space<vmem>>, %arg4: memref<32x32xf32, #tpu.memory_space<vmem>>, %arg5: memref<1x32xf32, #tpu.memory_space<vmem>>, %arg6: memref<1x32xf32, #tpu.memory_space<vmem>>, %arg7: memref<1x32xf32, #tpu.memory_space<vmem>>, %arg8: memref<32x32xf32, #tpu.memory_space<vmem>>, %arg9: memref<1x32xf32, #tpu.memory_space<vmem>>, %arg10: memref<32x32xf32, #tpu.memory_space<vmem>>, %arg11: memref<32x32xf32, #tpu.memory_space<vmem>>, %arg12: memref<8x2x32xf32, #tpu.memory_space<vmem>>, %arg13: memref<8x32xf32, #tpu.memory_space<vmem>>) attributes {dimension_semantics = [#tpu.dimension_semantics<parallel>], iteration_bounds = array<i64: 1>, scalar_prefetch = 0 : i64, scratch_operands = 1 : i64, tpu.core_type = #tpu.core_type<tc>, window_params = [{transform_indices = @transform_0, window_bounds = array<i64: 8, 2, 32>}, {pipeline_mode = #tpu.pipeline_mode<synchronous>, transform_indices = @transform_1, window_bounds = array<i64: 32, 32>}, {pipeline_mode = #tpu.pipeline_mode<synchronous>, transform_indices = @transform_2, window_bounds = array<i64: 32, 32>}, {pipeline_mode = #tpu.pipeline_mode<synchronous>, transform_indices = @transform_3, window_bounds = array<i64: 32, 32>}, {pipeline_mode = #tpu.pipeline_mode<synchronous>, transform_indices = @transform_4, window_bounds = array<i64: 1, 32>}, {pipeline_mode = #tpu.pipeline_mode<synchronous>, transform_indices = @transform_5, window_bounds = array<i64: 1, 32>}, {pipeline_mode = #tpu.pipeline_mode<synchronous>, transform_indices = @transform_6, window_bounds = array<i64: 1, 32>}, {pipeline_mode = #tpu.pipeline_mode<synchronous>, transform_indices = @transform_7, window_bounds = array<i64: 32, 32>}, {pipeline_mode = #tpu.pipeline_mode<synchronous>, transform_indices = @transform_8, window_bounds = array<i64: 1, 32>}, {pipeline_mode = #tpu.pipeline_mode<synchronous>, transform_indices = @transform_9, window_bounds = array<i64: 32, 32>}, {pipeline_mode = #tpu.pipeline_mode<synchronous>, transform_indices = @transform_10, window_bounds = array<i64: 32, 32>}, {transform_indices = @transform_11, window_bounds = array<i64: 8, 2, 32>}]} {
    %c0 = arith.constant 0 : index
    %c0_0 = arith.constant 0 : index
    %0 = vector.load %arg2[%c0, %c0_0] : memref<32x32xf32, #tpu.memory_space<vmem>>, vector<32x32xf32>
    %c0_1 = arith.constant 0 : index
    %c0_2 = arith.constant 0 : index
    %1 = vector.load %arg3[%c0_1, %c0_2] : memref<32x32xf32, #tpu.memory_space<vmem>>, vector<32x32xf32>
    %c0_3 = arith.constant 0 : index
    %c0_4 = arith.constant 0 : index
    %2 = vector.load %arg4[%c0_3, %c0_4] : memref<32x32xf32, #tpu.memory_space<vmem>>, vector<32x32xf32>
    %c0_5 = arith.constant 0 : index
    %c0_6 = arith.constant 0 : index
    %3 = vector.load %arg8[%c0_5, %c0_6] : memref<32x32xf32, #tpu.memory_space<vmem>>, vector<32x32xf32>
    %c0_7 = arith.constant 0 : index
    %c0_8 = arith.constant 0 : index
    %4 = vector.load %arg10[%c0_7, %c0_8] : memref<32x32xf32, #tpu.memory_space<vmem>>, vector<32x32xf32>
    %c0_9 = arith.constant 0 : index
    %c0_10 = arith.constant 0 : index
    %5 = vector.load %arg11[%c0_9, %c0_10] : memref<32x32xf32, #tpu.memory_space<vmem>>, vector<32x32xf32>
    %c0_11 = arith.constant 0 : index
    %c0_12 = arith.constant 0 : index
    %6 = vector.load %arg5[%c0_11, %c0_12] : memref<1x32xf32, #tpu.memory_space<vmem>>, vector<1x32xf32>
    %c0_13 = arith.constant 0 : index
    %c0_14 = arith.constant 0 : index
    %7 = vector.load %arg6[%c0_13, %c0_14] : memref<1x32xf32, #tpu.memory_space<vmem>>, vector<1x32xf32>
    %c0_15 = arith.constant 0 : index
    %c0_16 = arith.constant 0 : index
    %8 = vector.load %arg7[%c0_15, %c0_16] : memref<1x32xf32, #tpu.memory_space<vmem>>, vector<1x32xf32>
    %c0_17 = arith.constant 0 : index
    %c0_18 = arith.constant 0 : index
    %9 = vector.load %arg9[%c0_17, %c0_18] : memref<1x32xf32, #tpu.memory_space<vmem>>, vector<1x32xf32>
    %c0_19 = arith.constant 0 : index
    %c0_20 = arith.constant 0 : index
    %c0_21 = arith.constant 0 : index
    %10 = vector.load %arg1[%c0_19, %c0_20, %c0_21] : memref<8x2x32xf32, #tpu.memory_space<vmem>>, vector<8x1x32xf32>
    %11 = vector.shape_cast %10 : vector<8x1x32xf32> to vector<8x32xf32>
    %cst = arith.constant dense<0.000000e+00> : vector<8x32xf32>
    %12 = tpu.matmul %11, %0, %cst {dimension_numbers = #tpu.dot_dimension_numbers<[1], [0], [0], [1], [0, 0, 1, 1], [], []>} : vector<8x32xf32>, vector<32x32xf32>, vector<8x32xf32> -> vector<8x32xf32>
    %13 = vector.broadcast %6 : vector<1x32xf32> to vector<8x32xf32>
    %14 = arith.addf %12, %13 : vector<8x32xf32>
    %cst_22 = arith.constant dense<0.000000e+00> : vector<8x32xf32>
    %15 = tpu.matmul %11, %1, %cst_22 {dimension_numbers = #tpu.dot_dimension_numbers<[1], [0], [0], [1], [0, 0, 1, 1], [], []>} : vector<8x32xf32>, vector<32x32xf32>, vector<8x32xf32> -> vector<8x32xf32>
    %16 = vector.broadcast %7 : vector<1x32xf32> to vector<8x32xf32>
    %17 = arith.addf %15, %16 : vector<8x32xf32>
    %cst_23 = arith.constant dense<0.000000e+00> : vector<8x32xf32>
    %18 = tpu.matmul %11, %2, %cst_23 {dimension_numbers = #tpu.dot_dimension_numbers<[1], [0], [0], [1], [0, 0, 1, 1], [], []>} : vector<8x32xf32>, vector<32x32xf32>, vector<8x32xf32> -> vector<8x32xf32>
    %19 = vector.broadcast %8 : vector<1x32xf32> to vector<8x32xf32>
    %20 = arith.addf %18, %19 : vector<8x32xf32>
    %21 = vector.extract_strided_slice %14 {offsets = [0, 0], sizes = [8, 8], strides = [1, 1]} : vector<8x32xf32> to vector<8x8xf32>
    %22 = vector.extract_strided_slice %17 {offsets = [0, 0], sizes = [8, 8], strides = [1, 1]} : vector<8x32xf32> to vector<8x8xf32>
    %23 = vector.extract_strided_slice %20 {offsets = [0, 0], sizes = [8, 8], strides = [1, 1]} : vector<8x32xf32> to vector<8x8xf32>
    %cst_24 = arith.constant dense<0.000000e+00> : vector<8x8xf32>
    %24 = tpu.matmul %21, %22, %cst_24 {dimension_numbers = #tpu.dot_dimension_numbers<[1], [1], [0], [0], [0, 0, 1, 0], [], []>} : vector<8x8xf32>, vector<8x8xf32>, vector<8x8xf32> -> vector<8x8xf32>
    %cst_25 = arith.constant dense<0xFF800000> : vector<8xf32>
    %25 = vector.multi_reduction <maximumf>, %24, %cst_25 [1] : vector<8x8xf32> to vector<8xf32>
    %26 = vector.shape_cast %25 : vector<8xf32> to vector<8x1xf32>
    %27 = vector.broadcast %26 : vector<8x1xf32> to vector<8x8xf32>
    %28 = arith.subf %24, %27 : vector<8x8xf32>
    %29 = math.exp %28 : vector<8x8xf32>
    %cst_26 = arith.constant dense<0.000000e+00> : vector<8xf32>
    %30 = vector.multi_reduction <add>, %29, %cst_26 [1] : vector<8x8xf32> to vector<8xf32>
    %31 = vector.shape_cast %30 : vector<8xf32> to vector<8x1xf32>
    %cst_27 = arith.constant dense<0.000000e+00> : vector<8x8xf32>
    %32 = tpu.matmul %29, %23, %cst_27 {dimension_numbers = #tpu.dot_dimension_numbers<[1], [0], [0], [1], [0, 0, 1, 1], [], []>} : vector<8x8xf32>, vector<8x8xf32>, vector<8x8xf32> -> vector<8x8xf32>
    %33 = tpu.reciprocal %31 {approx = true} : vector<8x1xf32> -> vector<8x1xf32>
    %34 = vector.broadcast %33 : vector<8x1xf32> to vector<8x8xf32>
    %35 = arith.mulf %32, %34 : vector<8x8xf32>
    %c0_28 = arith.constant 0 : index
    %c0_29 = arith.constant 0 : index
    %36 = vector.load %arg13[%c0_28, %c0_29] : memref<8x32xf32, #tpu.memory_space<vmem>>, vector<8x8xf32>
    tpu.vector_store %arg13[%c0_28, %c0_29], %35 {strides = array<i32>} : memref<8x32xf32, #tpu.memory_space<vmem>>, vector<8x8xf32>,
    %37 = vector.extract_strided_slice %14 {offsets = [0, 8], sizes = [8, 8], strides = [1, 1]} : vector<8x32xf32> to vector<8x8xf32>
    %38 = vector.extract_strided_slice %17 {offsets = [0, 8], sizes = [8, 8], strides = [1, 1]} : vector<8x32xf32> to vector<8x8xf32>
    %39 = vector.extract_strided_slice %20 {offsets = [0, 8], sizes = [8, 8], strides = [1, 1]} : vector<8x32xf32> to vector<8x8xf32>
    %cst_30 = arith.constant dense<0.000000e+00> : vector<8x8xf32>
    %40 = tpu.matmul %37, %38, %cst_30 {dimension_numbers = #tpu.dot_dimension_numbers<[1], [1], [0], [0], [0, 0, 1, 0], [], []>} : vector<8x8xf32>, vector<8x8xf32>, vector<8x8xf32> -> vector<8x8xf32>
    %cst_31 = arith.constant dense<0xFF800000> : vector<8xf32>
    %41 = vector.multi_reduction <maximumf>, %40, %cst_31 [1] : vector<8x8xf32> to vector<8xf32>
    %42 = vector.shape_cast %41 : vector<8xf32> to vector<8x1xf32>
    %43 = vector.broadcast %42 : vector<8x1xf32> to vector<8x8xf32>
    %44 = arith.subf %40, %43 : vector<8x8xf32>
    %45 = math.exp %44 : vector<8x8xf32>
    %cst_32 = arith.constant dense<0.000000e+00> : vector<8xf32>
    %46 = vector.multi_reduction <add>, %45, %cst_32 [1] : vector<8x8xf32> to vector<8xf32>
    %47 = vector.shape_cast %46 : vector<8xf32> to vector<8x1xf32>
    %cst_33 = arith.constant dense<0.000000e+00> : vector<8x8xf32>
    %48 = tpu.matmul %45, %39, %cst_33 {dimension_numbers = #tpu.dot_dimension_numbers<[1], [0], [0], [1], [0, 0, 1, 1], [], []>} : vector<8x8xf32>, vector<8x8xf32>, vector<8x8xf32> -> vector<8x8xf32>
    %49 = tpu.reciprocal %47 {approx = true} : vector<8x1xf32> -> vector<8x1xf32>
    %50 = vector.broadcast %49 : vector<8x1xf32> to vector<8x8xf32>
    %51 = arith.mulf %48, %50 : vector<8x8xf32>
    %c0_34 = arith.constant 0 : index
    %c8 = arith.constant 8 : index
    %52 = vector.load %arg13[%c0_34, %c8] : memref<8x32xf32, #tpu.memory_space<vmem>>, vector<8x8xf32>
    tpu.vector_store %arg13[%c0_34, %c8], %51 {strides = array<i32>} : memref<8x32xf32, #tpu.memory_space<vmem>>, vector<8x8xf32>,
    %53 = vector.extract_strided_slice %14 {offsets = [0, 16], sizes = [8, 8], strides = [1, 1]} : vector<8x32xf32> to vector<8x8xf32>
    %54 = vector.extract_strided_slice %17 {offsets = [0, 16], sizes = [8, 8], strides = [1, 1]} : vector<8x32xf32> to vector<8x8xf32>
    %55 = vector.extract_strided_slice %20 {offsets = [0, 16], sizes = [8, 8], strides = [1, 1]} : vector<8x32xf32> to vector<8x8xf32>
    %cst_35 = arith.constant dense<0.000000e+00> : vector<8x8xf32>
    %56 = tpu.matmul %53, %54, %cst_35 {dimension_numbers = #tpu.dot_dimension_numbers<[1], [1], [0], [0], [0, 0, 1, 0], [], []>} : vector<8x8xf32>, vector<8x8xf32>, vector<8x8xf32> -> vector<8x8xf32>
    %cst_36 = arith.constant dense<0xFF800000> : vector<8xf32>
    %57 = vector.multi_reduction <maximumf>, %56, %cst_36 [1] : vector<8x8xf32> to vector<8xf32>
    %58 = vector.shape_cast %57 : vector<8xf32> to vector<8x1xf32>
    %59 = vector.broadcast %58 : vector<8x1xf32> to vector<8x8xf32>
    %60 = arith.subf %56, %59 : vector<8x8xf32>
    %61 = math.exp %60 : vector<8x8xf32>
    %cst_37 = arith.constant dense<0.000000e+00> : vector<8xf32>
    %62 = vector.multi_reduction <add>, %61, %cst_37 [1] : vector<8x8xf32> to vector<8xf32>
    %63 = vector.shape_cast %62 : vector<8xf32> to vector<8x1xf32>
    %cst_38 = arith.constant dense<0.000000e+00> : vector<8x8xf32>
    %64 = tpu.matmul %61, %55, %cst_38 {dimension_numbers = #tpu.dot_dimension_numbers<[1], [0], [0], [1], [0, 0, 1, 1], [], []>} : vector<8x8xf32>, vector<8x8xf32>, vector<8x8xf32> -> vector<8x8xf32>
    %65 = tpu.reciprocal %63 {approx = true} : vector<8x1xf32> -> vector<8x1xf32>
    %66 = vector.broadcast %65 : vector<8x1xf32> to vector<8x8xf32>
    %67 = arith.mulf %64, %66 : vector<8x8xf32>
    %c0_39 = arith.constant 0 : index
    %c16 = arith.constant 16 : index
    %68 = vector.load %arg13[%c0_39, %c16] : memref<8x32xf32, #tpu.memory_space<vmem>>, vector<8x8xf32>
    tpu.vector_store %arg13[%c0_39, %c16], %67 {strides = array<i32>} : memref<8x32xf32, #tpu.memory_space<vmem>>, vector<8x8xf32>,
    %69 = vector.extract_strided_slice %14 {offsets = [0, 24], sizes = [8, 8], strides = [1, 1]} : vector<8x32xf32> to vector<8x8xf32>
    %70 = vector.extract_strided_slice %17 {offsets = [0, 24], sizes = [8, 8], strides = [1, 1]} : vector<8x32xf32> to vector<8x8xf32>
    %71 = vector.extract_strided_slice %20 {offsets = [0, 24], sizes = [8, 8], strides = [1, 1]} : vector<8x32xf32> to vector<8x8xf32>
    %cst_40 = arith.constant dense<0.000000e+00> : vector<8x8xf32>
    %72 = tpu.matmul %69, %70, %cst_40 {dimension_numbers = #tpu.dot_dimension_numbers<[1], [1], [0], [0], [0, 0, 1, 0], [], []>} : vector<8x8xf32>, vector<8x8xf32>, vector<8x8xf32> -> vector<8x8xf32>
    %cst_41 = arith.constant dense<0xFF800000> : vector<8xf32>
    %73 = vector.multi_reduction <maximumf>, %72, %cst_41 [1] : vector<8x8xf32> to vector<8xf32>
    %74 = vector.shape_cast %73 : vector<8xf32> to vector<8x1xf32>
    %75 = vector.broadcast %74 : vector<8x1xf32> to vector<8x8xf32>
    %76 = arith.subf %72, %75 : vector<8x8xf32>
    %77 = math.exp %76 : vector<8x8xf32>
    %cst_42 = arith.constant dense<0.000000e+00> : vector<8xf32>
    %78 = vector.multi_reduction <add>, %77, %cst_42 [1] : vector<8x8xf32> to vector<8xf32>
    %79 = vector.shape_cast %78 : vector<8xf32> to vector<8x1xf32>
    %cst_43 = arith.constant dense<0.000000e+00> : vector<8x8xf32>
    %80 = tpu.matmul %77, %71, %cst_43 {dimension_numbers = #tpu.dot_dimension_numbers<[1], [0], [0], [1], [0, 0, 1, 1], [], []>} : vector<8x8xf32>, vector<8x8xf32>, vector<8x8xf32> -> vector<8x8xf32>
    %81 = tpu.reciprocal %79 {approx = true} : vector<8x1xf32> -> vector<8x1xf32>
    %82 = vector.broadcast %81 : vector<8x1xf32> to vector<8x8xf32>
    %83 = arith.mulf %80, %82 : vector<8x8xf32>
    %c0_44 = arith.constant 0 : index
    %c24 = arith.constant 24 : index
    %84 = vector.load %arg13[%c0_44, %c24] : memref<8x32xf32, #tpu.memory_space<vmem>>, vector<8x8xf32>
    tpu.vector_store %arg13[%c0_44, %c24], %83 {strides = array<i32>} : memref<8x32xf32, #tpu.memory_space<vmem>>, vector<8x8xf32>,
    %c0_45 = arith.constant 0 : index
    %c0_46 = arith.constant 0 : index
    %85 = vector.load %arg13[%c0_45, %c0_46] : memref<8x32xf32, #tpu.memory_space<vmem>>, vector<8x32xf32>
    %cst_47 = arith.constant dense<0.000000e+00> : vector<8x32xf32>
    %86 = tpu.matmul %85, %3, %cst_47 {dimension_numbers = #tpu.dot_dimension_numbers<[1], [0], [0], [1], [0, 0, 1, 1], [], []>} : vector<8x32xf32>, vector<32x32xf32>, vector<8x32xf32> -> vector<8x32xf32>
    %87 = vector.broadcast %9 : vector<1x32xf32> to vector<8x32xf32>
    %88 = arith.addf %86, %87 : vector<8x32xf32>
    %89 = arith.addf %88, %11 : vector<8x32xf32>
    %cst_48 = arith.constant dense<0.000000e+00> : vector<8x32xf32>
    %90 = tpu.matmul %89, %4, %cst_48 {dimension_numbers = #tpu.dot_dimension_numbers<[1], [0], [0], [1], [0, 0, 1, 1], [], []>} : vector<8x32xf32>, vector<32x32xf32>, vector<8x32xf32> -> vector<8x32xf32>
    %cst_49 = arith.constant dense<0.000000e+00> : vector<8x32xf32>
    %91 = tpu.matmul %90, %5, %cst_49 {dimension_numbers = #tpu.dot_dimension_numbers<[1], [0], [0], [1], [0, 0, 1, 1], [], []>} : vector<8x32xf32>, vector<32x32xf32>, vector<8x32xf32> -> vector<8x32xf32>
    %92 = arith.addf %91, %89 : vector<8x32xf32>
    %c0_50 = arith.constant 0 : index
    %c0_51 = arith.constant 0 : index
    %c0_52 = arith.constant 0 : index
    %93 = vector.load %arg12[%c0_50, %c0_51, %c0_52] : memref<8x2x32xf32, #tpu.memory_space<vmem>>, vector<8x1x32xf32>
    %94 = vector.shape_cast %93 : vector<8x1x32xf32> to vector<8x32xf32>
    %95 = vector.shape_cast %92 : vector<8x32xf32> to vector<8x1x32xf32>
    tpu.vector_store %arg12[%c0_50, %c0_51, %c0_52], %95 {strides = array<i32>} : memref<8x2x32xf32, #tpu.memory_space<vmem>>, vector<8x1x32xf32>,
    %c0_53 = arith.constant 0 : index
    %c1 = arith.constant 1 : index
    %c0_54 = arith.constant 0 : index
    %96 = vector.load %arg1[%c0_53, %c1, %c0_54] : memref<8x2x32xf32, #tpu.memory_space<vmem>>, vector<8x1x32xf32>
    %97 = vector.shape_cast %96 : vector<8x1x32xf32> to vector<8x32xf32>
    %cst_55 = arith.constant dense<0.000000e+00> : vector<8x32xf32>
    %98 = tpu.matmul %97, %0, %cst_55 {dimension_numbers = #tpu.dot_dimension_numbers<[1], [0], [0], [1], [0, 0, 1, 1], [], []>} : vector<8x32xf32>, vector<32x32xf32>, vector<8x32xf32> -> vector<8x32xf32>
    %99 = vector.broadcast %6 : vector<1x32xf32> to vector<8x32xf32>
    %100 = arith.addf %98, %99 : vector<8x32xf32>
    %cst_56 = arith.constant dense<0.000000e+00> : vector<8x32xf32>
    %101 = tpu.matmul %97, %1, %cst_56 {dimension_numbers = #tpu.dot_dimension_numbers<[1], [0], [0], [1], [0, 0, 1, 1], [], []>} : vector<8x32xf32>, vector<32x32xf32>, vector<8x32xf32> -> vector<8x32xf32>
    %102 = vector.broadcast %7 : vector<1x32xf32> to vector<8x32xf32>
    %103 = arith.addf %101, %102 : vector<8x32xf32>
    %cst_57 = arith.constant dense<0.000000e+00> : vector<8x32xf32>
    %104 = tpu.matmul %97, %2, %cst_57 {dimension_numbers = #tpu.dot_dimension_numbers<[1], [0], [0], [1], [0, 0, 1, 1], [], []>} : vector<8x32xf32>, vector<32x32xf32>, vector<8x32xf32> -> vector<8x32xf32>
    %105 = vector.broadcast %8 : vector<1x32xf32> to vector<8x32xf32>
    %106 = arith.addf %104, %105 : vector<8x32xf32>
    %107 = vector.extract_strided_slice %100 {offsets = [0, 0], sizes = [8, 8], strides = [1, 1]} : vector<8x32xf32> to vector<8x8xf32>
    %108 = vector.extract_strided_slice %103 {offsets = [0, 0], sizes = [8, 8], strides = [1, 1]} : vector<8x32xf32> to vector<8x8xf32>
    %109 = vector.extract_strided_slice %106 {offsets = [0, 0], sizes = [8, 8], strides = [1, 1]} : vector<8x32xf32> to vector<8x8xf32>
    %cst_58 = arith.constant dense<0.000000e+00> : vector<8x8xf32>
    %110 = tpu.matmul %107, %108, %cst_58 {dimension_numbers = #tpu.dot_dimension_numbers<[1], [1], [0], [0], [0, 0, 1, 0], [], []>} : vector<8x8xf32>, vector<8x8xf32>, vector<8x8xf32> -> vector<8x8xf32>
    %cst_59 = arith.constant dense<0xFF800000> : vector<8xf32>
    %111 = vector.multi_reduction <maximumf>, %110, %cst_59 [1] : vector<8x8xf32> to vector<8xf32>
    %112 = vector.shape_cast %111 : vector<8xf32> to vector<8x1xf32>
    %113 = vector.broadcast %112 : vector<8x1xf32> to vector<8x8xf32>
    %114 = arith.subf %110, %113 : vector<8x8xf32>
    %115 = math.exp %114 : vector<8x8xf32>
    %cst_60 = arith.constant dense<0.000000e+00> : vector<8xf32>
    %116 = vector.multi_reduction <add>, %115, %cst_60 [1] : vector<8x8xf32> to vector<8xf32>
    %117 = vector.shape_cast %116 : vector<8xf32> to vector<8x1xf32>
    %cst_61 = arith.constant dense<0.000000e+00> : vector<8x8xf32>
    %118 = tpu.matmul %115, %109, %cst_61 {dimension_numbers = #tpu.dot_dimension_numbers<[1], [0], [0], [1], [0, 0, 1, 1], [], []>} : vector<8x8xf32>, vector<8x8xf32>, vector<8x8xf32> -> vector<8x8xf32>
    %119 = tpu.reciprocal %117 {approx = true} : vector<8x1xf32> -> vector<8x1xf32>
    %120 = vector.broadcast %119 : vector<8x1xf32> to vector<8x8xf32>
    %121 = arith.mulf %118, %120 : vector<8x8xf32>
    %c0_62 = arith.constant 0 : index
    %c0_63 = arith.constant 0 : index
    %122 = vector.load %arg13[%c0_62, %c0_63] : memref<8x32xf32, #tpu.memory_space<vmem>>, vector<8x8xf32>
    tpu.vector_store %arg13[%c0_62, %c0_63], %121 {strides = array<i32>} : memref<8x32xf32, #tpu.memory_space<vmem>>, vector<8x8xf32>,
    %123 = vector.extract_strided_slice %100 {offsets = [0, 8], sizes = [8, 8], strides = [1, 1]} : vector<8x32xf32> to vector<8x8xf32>
    %124 = vector.extract_strided_slice %103 {offsets = [0, 8], sizes = [8, 8], strides = [1, 1]} : vector<8x32xf32> to vector<8x8xf32>
    %125 = vector.extract_strided_slice %106 {offsets = [0, 8], sizes = [8, 8], strides = [1, 1]} : vector<8x32xf32> to vector<8x8xf32>
    %cst_64 = arith.constant dense<0.000000e+00> : vector<8x8xf32>
    %126 = tpu.matmul %123, %124, %cst_64 {dimension_numbers = #tpu.dot_dimension_numbers<[1], [1], [0], [0], [0, 0, 1, 0], [], []>} : vector<8x8xf32>, vector<8x8xf32>, vector<8x8xf32> -> vector<8x8xf32>
    %cst_65 = arith.constant dense<0xFF800000> : vector<8xf32>
    %127 = vector.multi_reduction <maximumf>, %126, %cst_65 [1] : vector<8x8xf32> to vector<8xf32>
    %128 = vector.shape_cast %127 : vector<8xf32> to vector<8x1xf32>
    %129 = vector.broadcast %128 : vector<8x1xf32> to vector<8x8xf32>
    %130 = arith.subf %126, %129 : vector<8x8xf32>
    %131 = math.exp %130 : vector<8x8xf32>
    %cst_66 = arith.constant dense<0.000000e+00> : vector<8xf32>
    %132 = vector.multi_reduction <add>, %131, %cst_66 [1] : vector<8x8xf32> to vector<8xf32>
    %133 = vector.shape_cast %132 : vector<8xf32> to vector<8x1xf32>
    %cst_67 = arith.constant dense<0.000000e+00> : vector<8x8xf32>
    %134 = tpu.matmul %131, %125, %cst_67 {dimension_numbers = #tpu.dot_dimension_numbers<[1], [0], [0], [1], [0, 0, 1, 1], [], []>} : vector<8x8xf32>, vector<8x8xf32>, vector<8x8xf32> -> vector<8x8xf32>
    %135 = tpu.reciprocal %133 {approx = true} : vector<8x1xf32> -> vector<8x1xf32>
    %136 = vector.broadcast %135 : vector<8x1xf32> to vector<8x8xf32>
    %137 = arith.mulf %134, %136 : vector<8x8xf32>
    %c0_68 = arith.constant 0 : index
    %c8_69 = arith.constant 8 : index
    %138 = vector.load %arg13[%c0_68, %c8_69] : memref<8x32xf32, #tpu.memory_space<vmem>>, vector<8x8xf32>
    tpu.vector_store %arg13[%c0_68, %c8_69], %137 {strides = array<i32>} : memref<8x32xf32, #tpu.memory_space<vmem>>, vector<8x8xf32>,
    %139 = vector.extract_strided_slice %100 {offsets = [0, 16], sizes = [8, 8], strides = [1, 1]} : vector<8x32xf32> to vector<8x8xf32>
    %140 = vector.extract_strided_slice %103 {offsets = [0, 16], sizes = [8, 8], strides = [1, 1]} : vector<8x32xf32> to vector<8x8xf32>
    %141 = vector.extract_strided_slice %106 {offsets = [0, 16], sizes = [8, 8], strides = [1, 1]} : vector<8x32xf32> to vector<8x8xf32>
    %cst_70 = arith.constant dense<0.000000e+00> : vector<8x8xf32>
    %142 = tpu.matmul %139, %140, %cst_70 {dimension_numbers = #tpu.dot_dimension_numbers<[1], [1], [0], [0], [0, 0, 1, 0], [], []>} : vector<8x8xf32>, vector<8x8xf32>, vector<8x8xf32> -> vector<8x8xf32>
    %cst_71 = arith.constant dense<0xFF800000> : vector<8xf32>
    %143 = vector.multi_reduction <maximumf>, %142, %cst_71 [1] : vector<8x8xf32> to vector<8xf32>
    %144 = vector.shape_cast %143 : vector<8xf32> to vector<8x1xf32>
    %145 = vector.broadcast %144 : vector<8x1xf32> to vector<8x8xf32>
    %146 = arith.subf %142, %145 : vector<8x8xf32>
    %147 = math.exp %146 : vector<8x8xf32>
    %cst_72 = arith.constant dense<0.000000e+00> : vector<8xf32>
    %148 = vector.multi_reduction <add>, %147, %cst_72 [1] : vector<8x8xf32> to vector<8xf32>
    %149 = vector.shape_cast %148 : vector<8xf32> to vector<8x1xf32>
    %cst_73 = arith.constant dense<0.000000e+00> : vector<8x8xf32>
    %150 = tpu.matmul %147, %141, %cst_73 {dimension_numbers = #tpu.dot_dimension_numbers<[1], [0], [0], [1], [0, 0, 1, 1], [], []>} : vector<8x8xf32>, vector<8x8xf32>, vector<8x8xf32> -> vector<8x8xf32>
    %151 = tpu.reciprocal %149 {approx = true} : vector<8x1xf32> -> vector<8x1xf32>
    %152 = vector.broadcast %151 : vector<8x1xf32> to vector<8x8xf32>
    %153 = arith.mulf %150, %152 : vector<8x8xf32>
    %c0_74 = arith.constant 0 : index
    %c16_75 = arith.constant 16 : index
    %154 = vector.load %arg13[%c0_74, %c16_75] : memref<8x32xf32, #tpu.memory_space<vmem>>, vector<8x8xf32>
    tpu.vector_store %arg13[%c0_74, %c16_75], %153 {strides = array<i32>} : memref<8x32xf32, #tpu.memory_space<vmem>>, vector<8x8xf32>,
    %155 = vector.extract_strided_slice %100 {offsets = [0, 24], sizes = [8, 8], strides = [1, 1]} : vector<8x32xf32> to vector<8x8xf32>
    %156 = vector.extract_strided_slice %103 {offsets = [0, 24], sizes = [8, 8], strides = [1, 1]} : vector<8x32xf32> to vector<8x8xf32>
    %157 = vector.extract_strided_slice %106 {offsets = [0, 24], sizes = [8, 8], strides = [1, 1]} : vector<8x32xf32> to vector<8x8xf32>
    %cst_76 = arith.constant dense<0.000000e+00> : vector<8x8xf32>
    %158 = tpu.matmul %155, %156, %cst_76 {dimension_numbers = #tpu.dot_dimension_numbers<[1], [1], [0], [0], [0, 0, 1, 0], [], []>} : vector<8x8xf32>, vector<8x8xf32>, vector<8x8xf32> -> vector<8x8xf32>
    %cst_77 = arith.constant dense<0xFF800000> : vector<8xf32>
    %159 = vector.multi_reduction <maximumf>, %158, %cst_77 [1] : vector<8x8xf32> to vector<8xf32>
    %160 = vector.shape_cast %159 : vector<8xf32> to vector<8x1xf32>
    %161 = vector.broadcast %160 : vector<8x1xf32> to vector<8x8xf32>
    %162 = arith.subf %158, %161 : vector<8x8xf32>
    %163 = math.exp %162 : vector<8x8xf32>
    %cst_78 = arith.constant dense<0.000000e+00> : vector<8xf32>
    %164 = vector.multi_reduction <add>, %163, %cst_78 [1] : vector<8x8xf32> to vector<8xf32>
    %165 = vector.shape_cast %164 : vector<8xf32> to vector<8x1xf32>
    %cst_79 = arith.constant dense<0.000000e+00> : vector<8x8xf32>
    %166 = tpu.matmul %163, %157, %cst_79 {dimension_numbers = #tpu.dot_dimension_numbers<[1], [0], [0], [1], [0, 0, 1, 1], [], []>} : vector<8x8xf32>, vector<8x8xf32>, vector<8x8xf32> -> vector<8x8xf32>
    %167 = tpu.reciprocal %165 {approx = true} : vector<8x1xf32> -> vector<8x1xf32>
    %168 = vector.broadcast %167 : vector<8x1xf32> to vector<8x8xf32>
    %169 = arith.mulf %166, %168 : vector<8x8xf32>
    %c0_80 = arith.constant 0 : index
    %c24_81 = arith.constant 24 : index
    %170 = vector.load %arg13[%c0_80, %c24_81] : memref<8x32xf32, #tpu.memory_space<vmem>>, vector<8x8xf32>
    tpu.vector_store %arg13[%c0_80, %c24_81], %169 {strides = array<i32>} : memref<8x32xf32, #tpu.memory_space<vmem>>, vector<8x8xf32>,
    %c0_82 = arith.constant 0 : index
    %c0_83 = arith.constant 0 : index
    %171 = vector.load %arg13[%c0_82, %c0_83] : memref<8x32xf32, #tpu.memory_space<vmem>>, vector<8x32xf32>
    %cst_84 = arith.constant dense<0.000000e+00> : vector<8x32xf32>
    %172 = tpu.matmul %171, %3, %cst_84 {dimension_numbers = #tpu.dot_dimension_numbers<[1], [0], [0], [1], [0, 0, 1, 1], [], []>} : vector<8x32xf32>, vector<32x32xf32>, vector<8x32xf32> -> vector<8x32xf32>
    %173 = vector.broadcast %9 : vector<1x32xf32> to vector<8x32xf32>
    %174 = arith.addf %172, %173 : vector<8x32xf32>
    %175 = arith.addf %174, %97 : vector<8x32xf32>
    %cst_85 = arith.constant dense<0.000000e+00> : vector<8x32xf32>
    %176 = tpu.matmul %175, %4, %cst_85 {dimension_numbers = #tpu.dot_dimension_numbers<[1], [0], [0], [1], [0, 0, 1, 1], [], []>} : vector<8x32xf32>, vector<32x32xf32>, vector<8x32xf32> -> vector<8x32xf32>
    %cst_86 = arith.constant dense<0.000000e+00> : vector<8x32xf32>
    %177 = tpu.matmul %176, %5, %cst_86 {dimension_numbers = #tpu.dot_dimension_numbers<[1], [0], [0], [1], [0, 0, 1, 1], [], []>} : vector<8x32xf32>, vector<32x32xf32>, vector<8x32xf32> -> vector<8x32xf32>
    %178 = arith.addf %177, %175 : vector<8x32xf32>
    %c0_87 = arith.constant 0 : index
    %c1_88 = arith.constant 1 : index
    %c0_89 = arith.constant 0 : index
    %179 = vector.load %arg12[%c0_87, %c1_88, %c0_89] : memref<8x2x32xf32, #tpu.memory_space<vmem>>, vector<8x1x32xf32>
    %180 = vector.shape_cast %179 : vector<8x1x32xf32> to vector<8x32xf32>
    %181 = vector.shape_cast %178 : vector<8x32xf32> to vector<8x1x32xf32>
    tpu.vector_store %arg12[%c0_87, %c1_88, %c0_89], %181 {strides = array<i32>} : memref<8x2x32xf32, #tpu.memory_space<vmem>>, vector<8x1x32xf32>,
    return
  }
  func.func @transform_0(%arg0: i32) -> (i32, i32, i32) {
    %c0_i32 = arith.constant 0 : i32
    %c0_i32_0 = arith.constant 0 : i32
    %c0_i32_1 = arith.constant 0 : i32
    return %c0_i32, %arg0, %c0_i32_0 : i32, i32, i32
  }
  func.func @transform_1(%arg0: i32) -> (i32, i32) {
    %c0_i32 = arith.constant 0 : i32
    %c0_i32_0 = arith.constant 0 : i32
    %c0_i32_1 = arith.constant 0 : i32
    return %c0_i32, %c0_i32_0 : i32, i32
  }
  func.func @transform_2(%arg0: i32) -> (i32, i32) {
    %c0_i32 = arith.constant 0 : i32
    %c0_i32_0 = arith.constant 0 : i32
    %c0_i32_1 = arith.constant 0 : i32
    return %c0_i32, %c0_i32_0 : i32, i32
  }
  func.func @transform_3(%arg0: i32) -> (i32, i32) {
    %c0_i32 = arith.constant 0 : i32
    %c0_i32_0 = arith.constant 0 : i32
    %c0_i32_1 = arith.constant 0 : i32
    return %c0_i32, %c0_i32_0 : i32, i32
  }
  func.func @transform_4(%arg0: i32) -> (i32, i32) {
    %c0_i32 = arith.constant 0 : i32
    %c0_i32_0 = arith.constant 0 : i32
    %c0_i32_1 = arith.constant 0 : i32
    return %c0_i32, %c0_i32_0 : i32, i32
  }
  func.func @transform_5(%arg0: i32) -> (i32, i32) {
    %c0_i32 = arith.constant 0 : i32
    %c0_i32_0 = arith.constant 0 : i32
    %c0_i32_1 = arith.constant 0 : i32
    return %c0_i32, %c0_i32_0 : i32, i32
  }
  func.func @transform_6(%arg0: i32) -> (i32, i32) {
    %c0_i32 = arith.constant 0 : i32
    %c0_i32_0 = arith.constant 0 : i32
    %c0_i32_1 = arith.constant 0 : i32
    return %c0_i32, %c0_i32_0 : i32, i32
  }
  func.func @transform_7(%arg0: i32) -> (i32, i32) {
    %c0_i32 = arith.constant 0 : i32
    %c0_i32_0 = arith.constant 0 : i32
    %c0_i32_1 = arith.constant 0 : i32
    return %c0_i32, %c0_i32_0 : i32, i32
  }
  func.func @transform_8(%arg0: i32) -> (i32, i32) {
    %c0_i32 = arith.constant 0 : i32
    %c0_i32_0 = arith.constant 0 : i32
    %c0_i32_1 = arith.constant 0 : i32
    return %c0_i32, %c0_i32_0 : i32, i32
  }
  func.func @transform_9(%arg0: i32) -> (i32, i32) {
    %c0_i32 = arith.constant 0 : i32
    %c0_i32_0 = arith.constant 0 : i32
    %c0_i32_1 = arith.constant 0 : i32
    return %c0_i32, %c0_i32_0 : i32, i32
  }
  func.func @transform_10(%arg0: i32) -> (i32, i32) {
    %c0_i32 = arith.constant 0 : i32
    %c0_i32_0 = arith.constant 0 : i32
    %c0_i32_1 = arith.constant 0 : i32
    return %c0_i32, %c0_i32_0 : i32, i32
  }
  func.func @transform_11(%arg0: i32) -> (i32, i32, i32) {
    %c0_i32 = arith.constant 0 : i32
    %c0_i32_0 = arith.constant 0 : i32
    %c0_i32_1 = arith.constant 0 : i32
    return %c0_i32, %arg0, %c0_i32_0 : i32, i32, i32
  }
}

</mosaic_0001>

<bundles_post_ra>
// kernel: tpu_custom_call.1
= control target key start
LH: loop header
LB: loop body
LE: loop exit
PB: predicated region body
PF: predicated region fallthrough
CT: control target
= control target key end

     0   :  { %16 = vsyncpa [#allocation4], 0  ;;  %s3850_s0 = inlined_call_operand.hbm [shape: f32[8,2,32], index: 0, kind: input, shape index: {}]   ;;  %s3851_s1 = inlined_call_operand.hbm [shape: f32[32,32], index: 1, kind: input, shape index: {}]   ;;  %s3852_s2 = inlined_call_operand.hbm [shape: f32[32,32], index: 2, kind: input, shape index: {}]   ;;  %s3853_s3 = inlined_call_operand.hbm [shape: f32[32,32], index: 3, kind: input, shape index: {}]   ;;  %s3854_s4 = inlined_call_operand.vmem [shape: f32[1,32], index: 4, kind: input, shape index: {}]   ;;  %s3855_s5 = inlined_call_operand.vmem [shape: f32[1,32], index: 5, kind: input, shape index: {}]   ;;  %s3856_s6 = inlined_call_operand.hbm [shape: f32[1,32], index: 6, kind: input, shape index: {}]   ;;  %s3857_s7 = inlined_call_operand.hbm [shape: f32[32,32], index: 7, kind: input, shape index: {}]   ;;  %s3858_s8 = inlined_call_operand.hbm [shape: f32[1,32], index: 8, kind: input, shape index: {}]   ;;  %s3859_s9 = inlined_call_operand.vmem [shape: f32[32,32], index: 9, kind: input, shape index: {}]   ;;  %s3860_s10 = inlined_call_operand.hbm [shape: f32[32,32], index: 10, kind: input, shape index: {}]   ;;  %s3861_s11 = inlined_call_operand.hbm [shape: f32[8,2,32], index: 11, kind: output, shape index: {}]  }
   0x1   :  { %17 = vsyncpa [#allocation7], 0 }
   0x2   :  { %18 = vsyncpa [#allocation10], 0 }
   0x3   :  { %19 = vsyncpa [#allocation13], 0 }
   0x4   :  { %20 = vsyncpa [#allocation16], 0 }
   0x5   :  { %21 = vsyncpa [#allocation5], 0  ;;  %s3314_s17 = smov [#allocation6]   ;;  %s3104_s21 = scalar_lea.hbm %s3851_s1, 512 }
   0x6   :  { %s39_s18 = sshll.u32 %s3314_s17, 4  ;;  %p3105_p0 = scmp.ne.s32.totalorder %s3851_s1, %s3104_s21  ;;  %s40_s18 = int_to_ptr.vmem [resolvable:$true] %s39_s18 }
   0x7   :  { %p3108_p1 = scmp.lt.u32.totalorder %s3104_s21, %s3851_s1 }
   0x9   :  { %p3110_p2 = pnand %p3108_p1, %p3105_p0 }
   0xb   :  { %3113 = shalt.err (!%p3110_p2)
}
   0xc   :  { %s3114_s26 = scalar_lea.vmem %s40_s18, 512  ;;  %p3119_p4 = scmp.lt.s32.totalorder %s40_s18, %s40_s18 }
   0xd   :  { %p3115_p3 = scmp.ne.s32.totalorder %s40_s18, %s3114_s26  ;;  %p3120_p5 = scmp.lt.s32.totalorder %s3114_s26, %s3114_s26 }
   0xf   :  { %p3121_p6 = por %p3120_p5, %p3119_p4 }
  0x11   :  { %p3122_p7 = pnand %p3121_p6, %p3115_p3 }
  0x13   :  { %3125 = shalt.err (!%p3122_p7)
}
  0x14   :  { %s3315_s27 = smov 128   ;;  %s3316_s28 = smov 8  }
  0x15   :  { %45 = dma.hbm_to_vmem [thread:$0]  %s3851_s1, 512, %s40_s18, [#allocation7], %s3315_s27, %s3315_s27, %s3316_s28  }
  0x16   :  { %s3317_s12 = smov [#allocation9]   ;;  %s3318_s14 = smov [#allocation12]  }
  0x17   :  { %s63_s13 = sshll.u32 %s3317_s12, 4  ;;  %s89_s15 = sshll.u32 %s3318_s14, 4  ;;  %s64_s13 = int_to_ptr.vmem [resolvable:$true] %s63_s13  ;;  %s90_s15 = int_to_ptr.vmem [resolvable:$true] %s89_s15 }
  0x18   :  { %s3126_s19 = scalar_lea.hbm %s3853_s3, 512 }
  0x19   :  { %p3127_p8 = scmp.ne.s32.totalorder %s3853_s3, %s3126_s19  ;;  %p3130_p9 = scmp.lt.u32.totalorder %s3126_s19, %s3853_s3 }
  0x1b   :  { %p3132_p10 = pnand %p3130_p9, %p3127_p8 }
  0x1d   :  { %3135 = shalt.err (!%p3132_p10)
}
  0x1e   :  { %s3136_s1 = scalar_lea.vmem %s64_s13, 512  ;;  %p3141_p12 = scmp.lt.s32.totalorder %s64_s13, %s64_s13 }
  0x1f   :  { %p3137_p11 = scmp.ne.s32.totalorder %s64_s13, %s3136_s1  ;;  %p3142_p13 = scmp.lt.s32.totalorder %s3136_s1, %s3136_s1 }
  0x21   :  { %p3143_p0 = por %p3142_p13, %p3141_p12 }
  0x23   :  { %p3144_p1 = pnand %p3143_p0, %p3137_p11 }
  0x25   :  { %3147 = shalt.err (!%p3144_p1)
}
  0x26   :  { %69 = dma.hbm_to_vmem [thread:$0]  %s3853_s3, 512, %s64_s13, [#allocation10], %s3315_s27, %s3315_s27, %s3316_s28  }
  0x27   :  { %s3148_s29 = scalar_lea.hbm %s3857_s7, 512 }
  0x28   :  { %p3149_p2 = scmp.ne.s32.totalorder %s3857_s7, %s3148_s29  ;;  %p3152_p3 = scmp.lt.u32.totalorder %s3148_s29, %s3857_s7 }
  0x2a   :  { %p3154_p4 = pnand %p3152_p3, %p3149_p2 }
  0x2c   :  { %3157 = shalt.err (!%p3154_p4)
}
  0x2d   :  { %s3158_s17 = scalar_lea.vmem %s90_s15, 512  ;;  %p3163_p6 = scmp.lt.s32.totalorder %s90_s15, %s90_s15 }
  0x2e   :  { %p3159_p5 = scmp.ne.s32.totalorder %s90_s15, %s3158_s17  ;;  %p3164_p7 = scmp.lt.s32.totalorder %s3158_s17, %s3158_s17 }
  0x30   :  { %p3165_p8 = por %p3164_p7, %p3163_p6 }
  0x32   :  { %p3166_p9 = pnand %p3165_p8, %p3159_p5 }
  0x34   :  { %3169 = shalt.err (!%p3166_p9)
}
  0x35   :  { %95 = dma.hbm_to_vmem [thread:$0]  %s3857_s7, 512, %s90_s15, [#allocation13], %s3315_s27, %s3315_s27, %s3316_s28  }
  0x36   :  { %s3319_s19 = smov [#allocation3]   ;;  %s3170_s23 = scalar_lea.hbm %s3850_s0, 256 }
  0x37   :  { %s27_s20 = sshll.u32 %s3319_s19, 4  ;;  %p3171_p10 = scmp.ne.s32.totalorder %s3850_s0, %s3170_s23  ;;  %s28_s20 = int_to_ptr.vmem [resolvable:$true] %s27_s20 }
  0x38   :  { %p3174_p11 = scmp.lt.u32.totalorder %s3170_s23, %s3850_s0 }
  0x3a   :  { %p3176_p12 = pnand %p3174_p11, %p3171_p10 }
  0x3c   :  { %3179 = shalt.err (!%p3176_p12)
}
  0x3d   :  { %s3180_s26 = scalar_lea.vmem %s28_s20, 256  ;;  %p3185_p0 = scmp.lt.s32.totalorder %s28_s20, %s28_s20 }
  0x3e   :  { %p3181_p13 = scmp.ne.s32.totalorder %s28_s20, %s3180_s26  ;;  %p3186_p1 = scmp.lt.s32.totalorder %s3180_s26, %s3180_s26 }
  0x40   :  { %p3187_p2 = por %p3186_p1, %p3185_p0 }
  0x42   :  { %p3188_p3 = pnand %p3187_p2, %p3181_p13 }
  0x44   :  { %3191 = shalt.err (!%p3188_p3)
}
  0x45   :  { %s3320_s7 = smov 32   ;;  %s3321_s15 = smov 2  }
  0x46   :  { %33 = dma.hbm_to_vmem [thread:$0]  %s3850_s0, 256, %s28_s20, [#allocation4], %s3320_s7, %s3320_s7, %s3321_s15  }
  0x47   :  { %s3322_s12 = smov [#allocation8]   ;;  %s3323_s16 = smov [#allocation11]  }
  0x48   :  { %s51_s14 = sshll.u32 %s3322_s12, 4  ;;  %s80_s17 = sshll.u32 %s3323_s16, 4  ;;  %s52_s14 = int_to_ptr.vmem [resolvable:$true] %s51_s14  ;;  %s81_s17 = int_to_ptr.vmem [resolvable:$true] %s80_s17 }
  0x49   :  { %s3192_s19 = scalar_lea.hbm %s3852_s2, 512 }
  0x4a   :  { %p3193_p4 = scmp.ne.s32.totalorder %s3852_s2, %s3192_s19  ;;  %p3196_p5 = scmp.lt.u32.totalorder %s3192_s19, %s3852_s2 }
  0x4c   :  { %p3198_p6 = pnand %p3196_p5, %p3193_p4 }
  0x4e   :  { %3201 = shalt.err (!%p3198_p6)
}
  0x4f   :  { %s3202_s0 = scalar_lea.vmem %s52_s14, 512  ;;  %p3207_p8 = scmp.lt.s32.totalorder %s52_s14, %s52_s14 }
  0x50   :  { %p3203_p7 = scmp.ne.s32.totalorder %s52_s14, %s3202_s0  ;;  %p3208_p9 = scmp.lt.s32.totalorder %s3202_s0, %s3202_s0 }
  0x52   :  { %p3209_p10 = por %p3208_p9, %p3207_p8 }
  0x54   :  { %p3210_p11 = pnand %p3209_p10, %p3203_p7 }
  0x56   :  { %3213 = shalt.err (!%p3210_p11)
}
  0x57   :  { %57 = dma.hbm_to_vmem [thread:$0]  %s3852_s2, 512, %s52_s14, [#allocation7], %s3315_s27, %s3315_s27, %s3316_s28  }
  0x58   :  { %s3214_s26 = scalar_lea.hbm %s3856_s6, 16 }
  0x59   :  { %p3215_p12 = scmp.ne.s32.totalorder %s3856_s6, %s3214_s26  ;;  %p3218_p13 = scmp.lt.u32.totalorder %s3214_s26, %s3856_s6 }
  0x5b   :  { %p3220_p0 = pnand %p3218_p13, %p3215_p12 }
  0x5d   :  { %3223 = shalt.err (!%p3220_p0)
}
  0x5e   :  { %s3224_s3 = scalar_lea.vmem %s81_s17, 16  ;;  %s3228_s13 = scalar_lea.vmem %s81_s17, 32 }
  0x5f   :  { %p3225_p1 = scmp.ne.s32.totalorder %s81_s17, %s3224_s3  ;;  %p3229_p2 = scmp.lt.s32.totalorder %s81_s17, %s81_s17 }
  0x60   :  { %p3230_p3 = scmp.lt.s32.totalorder %s3228_s13, %s3224_s3 }
  0x62   :  { %p3231_p4 = por %p3230_p3, %p3229_p2 }
  0x64   :  { %p3232_p5 = pnand %p3231_p4, %p3225_p1 }
  0x66   :  { %3235 = shalt.err (!%p3232_p5)
}
  0x67   :  { %83 = dma.hbm_to_vmem [thread:$0]  %s3856_s6, 16, %s81_s17, [#allocation10]  }
  0x68   :  { %s3324_s19 = smov [#allocation14]   ;;  %s3325_s22 = smov [#allocation15]  }
  0x69   :  { %s102_s21 = sshll.u32 %s3324_s19, 4  ;;  %s113_s23 = sshll.u32 %s3325_s22, 4  ;;  %s103_s21 = int_to_ptr.vmem [resolvable:$true] %s102_s21  ;;  %s3483_s23 = int_to_ptr.vmem [resolvable:$true] %s113_s23 }
  0x6a   :  { %s3236_s20 = scalar_lea.hbm %s3858_s8, 16 }
  0x6b   :  { %p3237_p6 = scmp.ne.s32.totalorder %s3858_s8, %s3236_s20  ;;  %p3240_p7 = scmp.lt.u32.totalorder %s3236_s20, %s3858_s8 }
  0x6d   :  { %p3242_p8 = pnand %p3240_p7, %p3237_p6 }
  0x6f   :  { %3245 = shalt.err (!%p3242_p8)
}
  0x70   :  { %s3246_s6 = scalar_lea.vmem %s103_s21, 16  ;;  %s3250_s17 = scalar_lea.vmem %s103_s21, 32 }
  0x71   :  { %p3247_p9 = scmp.ne.s32.totalorder %s103_s21, %s3246_s6  ;;  %p3251_p10 = scmp.lt.s32.totalorder %s103_s21, %s103_s21 }
  0x72   :  { %p3252_p11 = scmp.lt.s32.totalorder %s3250_s17, %s3246_s6 }
  0x74   :  { %p3253_p12 = por %p3252_p11, %p3251_p10 }
  0x76   :  { %p3254_p13 = pnand %p3253_p12, %p3247_p9 }
  0x78   :  { %3257 = shalt.err (!%p3254_p13)
}
  0x79   :  { %105 = dma.hbm_to_vmem [thread:$0]  %s3858_s8, 16, %s103_s21, [#allocation13]  }
  0x7a   :  { %s3258_s3 = scalar_lea.hbm %s3860_s10, 512 }
  0x7b   :  { %p3259_p0 = scmp.ne.s32.totalorder %s3860_s10, %s3258_s3  ;;  %p3262_p1 = scmp.lt.u32.totalorder %s3258_s3, %s3860_s10 }
  0x7d   :  { %p3264_p2 = pnand %p3262_p1, %p3259_p0 }
  0x7f   :  { %3267 = shalt.err (!%p3264_p2)
}
  0x80   :  { %s3268_s22 = scalar_lea.vmem %s3483_s23, 512  ;;  %p3273_p4 = scmp.lt.s32.totalorder %s3483_s23, %s3483_s23 }
  0x81   :  { %p3269_p3 = scmp.ne.s32.totalorder %s3483_s23, %s3268_s22  ;;  %p3274_p5 = scmp.lt.s32.totalorder %s3268_s22, %s3268_s22 }
  0x83   :  { %p3275_p6 = por %p3274_p5, %p3273_p4 }
  0x85   :  { %p3276_p7 = pnand %p3275_p6, %p3269_p3 }
  0x87   :  { %3279 = shalt.err (!%p3276_p7)
}
  0x88   :  { %119 = dma.hbm_to_vmem [thread:$0]  %s3860_s10, 512, %s3483_s23, [#allocation16], %s3315_s27, %s3315_s27, %s3316_s28  }
  0x89   :  { %3302 = dma.done.wait [#allocation4], 256  }
  0x8a   :  { %3303 = vsyncadd [#allocation4], 4294967040 }
  0x8b   :  { %3304 = dma.done.wait [#allocation7], 1024  }
  0x8c   :  { %3305 = vsyncadd [#allocation7], 4294966272 }
  0x8d   :  { %3306 = dma.done.wait [#allocation10], 528  }
  0x8e   :  { %3307 = vsyncadd [#allocation10], 4294966768 }
  0x8f   :  { %3308 = dma.done.wait [#allocation13], 528  }
  0x90   :  { %3309 = vsyncadd [#allocation13], 4294966768 }
  0x91   :  { %3310 = dma.done.wait [#allocation16], 512  }
  0x92   :  { %3311 = vsyncadd [#allocation16], 4294966784  ;;  %v3326_v0 = vmov 0.0|0.0   ;;  %vm3327_vm0 = vmmov 0   ;;  %v3328_v1 = vmov 0.0   ;;  %v144_v2 = vld [vmem:[#allocation6] sm:$0xff] }
  0x93   :  { %2978 = vmatprep.subr.bf16.mxu0 %v3326_v0  ;;  %2984 = vmatprep.subr.bf16.mxu1 %v3326_v0  ;;  %v145_v3 = vld [vmem:[#allocation6 + $0x8] sm:$0xff]  ;;  %v148_v4 = vld [vmem:[#allocation8] sm:$0xff]  ;;  %v146_v7 = vld [vmem:[#allocation6 + $0x10] sm:$0xff]  ;;  %vm195_vm1 = vcmask 1041409   ;;  %vm198_vm2 = vcmask 1042434   ;;  %vm201_vm3 = vcmask 1043459  }
  0x94   :  { %2774 = vmatprep.mubr.msk.f32.mxu0 %vm3327_vm0, %v3328_v1  ;;  %2785 = vmatprep.mubr.msk.f32.mxu1 %vm3327_vm0, %v3328_v1  ;;  %v3523_v5 = vpack.c.bf16 %v145_v3, %v144_v2  ;;  %v149_v6 = vld [vmem:[#allocation8 + $0x8] sm:$0xff]  ;;  %v147_v8 = vld [vmem:[#allocation6 + $0x18] sm:$0xff]  ;;  %v150_v10 = vld [vmem:[#allocation8 + $0x10] sm:$0xff]  ;;  %vm204_vm4 = vcmask 1044484   ;;  %vm207_vm5 = vcmask 1045509   ;;  %vm210_vm6 = vcmask 1046534  }
  0x95   :  { %v3525_v9 = vpack.c.bf16 %v149_v6, %v148_v4  ;;  %v151_v11 = vld [vmem:[#allocation8 + $0x18] sm:$0xff]  ;;  %v3528_v12 = vpack.c.bf16 %v147_v8, %v146_v7  ;;  %v173_v13 = vld [vmem:[#allocation3 + $0x2] sm:$0x1]  ;;  %v174_v14 = vld [vmem:[#allocation3 + $0x4] sm:$0x1]  ;;  %vm213_vm7 = vcmask 1047559  }
  0x96   :  { %2980 = vmatpush3.bf16.msra.mxu0 %v3523_v5  ;;  %v175_v15 = vld [vmem:[#allocation3 + $0x6] sm:$0x1]  ;;  %v3532_v16 = vpack.c.bf16 %v151_v11, %v150_v10  ;;  %v172_v17 = vld [vmem:[#allocation3] sm:$0x1]  ;;  %v176_v18 = vld [vmem:[#allocation3 + $0x8] sm:$0x1] }
  0x97   :  { %2986 = vmatpush3.bf16.msra.mxu1 %v3525_v9  ;;  %2981 = vmatprep.subr.bf16.mxu0 %v3326_v0  ;;  %v177_v19 = vld [vmem:[#allocation3 + $0xa] sm:$0x1]  ;;  %v178_v20 = vld [vmem:[#allocation3 + $0xc] sm:$0x1]  ;;  %v194_v21 = vrot.slane %v173_v13, 7  ;;  %v197_v22 = vrot.slane %v174_v14, 6 }
  0x98   :  { %2987 = vmatprep.subr.bf16.mxu1 %v3326_v0  ;;  %v200_v23 = vrot.slane %v175_v15, 5  ;;  %v179_v24 = vld [vmem:[#allocation3 + $0xe] sm:$0x1]  ;;  %v203_v25 = vrot.slane %v176_v18, 4  ;;  %v206_v27 = vrot.slane %v177_v19, 3  ;;  %v209_v29 = vrot.slane %v178_v20, 2 }
  0x99   :  { %v196_v26 = vsel %vm195_vm1, %v194_v21, %v172_v17  ;;  %v212_v31 = vrot.slane %v179_v24, 1  ;;  %vm215_vm8 = vcmask 261120   ;;  %v152_v36 = vld [vmem:[#allocation9] sm:$0xff]  ;;  %v153_v37 = vld [vmem:[#allocation9 + $0x8] sm:$0xff]  ;;  %v154_v38 = vld [vmem:[#allocation9 + $0x10] sm:$0xff]  ;;  %vm440_vm9 = vcmask 64512  }
  0x9a   :  { %2983 = vmatpush3.bf16.msra.mxu0 %v3528_v12  ;;  %v199_v28 = vsel %vm198_vm2, %v197_v22, %v196_v26  ;;  %v3556_v39 = vpack.c.bf16 %v153_v37, %v152_v36  ;;  %v155_v40 = vld [vmem:[#allocation9 + $0x18] sm:$0xff]  ;;  %v3571_v42 = vld [vmem:[%s3854_s4] ss:$0 sm:$0xff]  ;;  %s3329_s0 = smov 120   ;;  %s3330_s4 = smov 112   ;;  %vm772_vm10 = vcmask 130112  }
  0x9b   :  { %2989 = vmatpush3.bf16.msra.mxu1 %v3532_v16  ;;  %2990 = vmatprep.subr.bf16.mxu0 %v3326_v0  ;;  %v202_v30 = vsel %vm201_vm3, %v200_v23, %v199_v28  ;;  %v3559_v41 = vpack.c.bf16 %v155_v40, %v154_v38  ;;  %v3576_v43 = vld [vmem:[%s3855_s5] ss:$0 sm:$0xff]  ;;  %s3331_s5 = smov 104   ;;  %v3590_v50 = vld [vmem:[#allocation11] ss:$0 sm:$0xff]  ;;  %s3332_s26 = smov 16  }
  0x9c   :  { %2799 = vmatprep.subr.mxu1 %v3328_v1  ;;  %v205_v32 = vsel %vm204_vm4, %v203_v25, %v202_v30  ;;  %s3333_s6 = smov 24   ;;  %vm943_vm11 = vcmask 195712   ;;  %vm1114_vm12 = vcmask 261312   ;;  %vm1402_vm13 = vcmask 253952  }
  0x9d   :  { %v208_v33 = vsel %vm207_vm5, %v206_v27, %v205_v32 }
  0x9e   :  { %v211_v34 = vsel %vm210_vm6, %v209_v29, %v208_v33 }
  0x9f   :  { %v3546_v35 = vsel %vm213_vm7, %v212_v31, %v211_v34 }
  0xa0   :  { %2775 = vmatmul.mubr.msk.f32.vlgmr.msra.gmra.mrb[0].mxu0 %vm215_vm8, %v3546_v35  ;;  %2786 = vmatmul.mubr.msk.f32.vlgmr.msra.gmra.mrb[0].mxu1 %vm215_vm8, %v3546_v35 }
  0xa1   :  { %2801 = vmatprep.mubr.msk.f32.mxu1 %vm3327_vm0, %v3328_v1  ;;  %2796 = vmatprep.mubr.msk.f32.mxu0 %vm3327_vm0, %v3328_v1 }
  0xa2   :  { %2992 = vmatpush3.bf16.msra.mxu0 %v3556_v39 }
  0xa3   :  { %2993 = vmatprep.subr.bf16.mxu0 %v3326_v0 }
  0xa6   :  { %2995 = vmatpush3.bf16.msra.mxu0 %v3559_v41 }
  0xa7   :  { %2819 = vmatprep.subr.mxu0 %v3328_v1 }
  0xa9   :  { %2797 = vmatmul.mubr.msk.f32.vlgmr.msra.gmra.mrb[2].mxu0 %vm215_vm8, %v3546_v35 }
  0xaa   :  { %2821 = vmatprep.mubr.msk.f32.mxu0 %vm3327_vm0, %v3328_v1 }
 0x173   :  { %v284_v44 = vpop.f32.mrb[0].mxu0  ;;  %v360_v45 = vpop.f32.mrb[0].mxu1 }
 0x174   :  { %v285_v46 = vadd.f32 %v3571_v42, %v284_v44  ;;  %v361_v47 = vadd.f32 %v3576_v43, %v360_v45  ;;  %v2787_v48 = vpop.f32.mrb[1].mxu1  ;;  %v2776_v49 = vpop.f32.mrb[1].mxu0 }
 0x176   :  { %2800 = vmatpush3.xpose.msk.msra.mxu1 %vm440_vm9, %v361_v47  ;;  %602 = vrot.lane.b32.xlu1 %v285_v46, %s3329_s0 }
 0x177   :  { %2804 = vmatprep.subr.mxu1 %v3328_v1 }
 0x179   :  { %2802 = vmatmul.mubr.msk.f32.vlgmr.msra.gmra.mrb[2].mxu1 %vm440_vm9, %v285_v46 }
 0x17a   :  { %776 = vrot.lane.b32.xlu1 %v361_v47, %s3330_s4  ;;  %2806 = vmatprep.mubr.msk.f32.mxu1 %vm3327_vm0, %v3328_v1 }
 0x17c   :  { %v436_v51 = vpop.f32.mrb[2].mxu0 }
 0x17d   :  { %v437_v52 = vadd.f32 %v3590_v50, %v436_v51  ;;  %v2798_v53 = vpop.f32.mrb[3].mxu0  ;;  %v156_v51 = vld [vmem:[#allocation12] sm:$0xff] }
 0x17e   :  { %774 = vrot.lane.b32.xlu1 %v285_v46, %s3330_s4 }
 0x17f   :  { %2805 = vmatpush3.msra.mxu1 %v437_v52 }
 0x180   :  { %2809 = vmatprep.subr.mxu1 %v3328_v1 }
 0x182   :  { %947 = vrot.lane.b32.xlu1 %v361_v47, %s3331_s5 }
 0x186   :  { %945 = vrot.lane.b32.xlu1 %v285_v46, %s3331_s5 }
 0x18a   :  { %861 = vrot.lane.b32.xlu1 %v437_v52, %s3330_s4 }
 0x1e8   :  { %v603_v54 = vpop.permute.xlu1 %602 }
 0x1ec   :  { %v777_v55 = vpop.permute.xlu1 %776 }
 0x1ed   :  { %2820 = vmatpush3.xpose.msk.msra.mxu0 %vm440_vm9, %v777_v55  ;;  %v159_v55 = vld [vmem:[#allocation12 + $0x18] sm:$0xff] }
 0x1ee   :  { %2829 = vmatprep.subr.mxu0 %v3328_v1 }
 0x1f0   :  { %v775_v56 = vpop.permute.xlu1 %774 }
 0x1f1   :  { %2822 = vmatmul.mubr.msk.f32.vlgmr.msra.gmra.mrb[4].mxu0 %vm440_vm9, %v775_v56 }
 0x1f2   :  { %2831 = vmatprep.mubr.msk.f32.mxu0 %vm3327_vm0, %v3328_v1 }
 0x1f4   :  { %v948_v57 = vpop.permute.xlu1 %947 }
 0x1f5   :  { %2830 = vmatpush3.xpose.msk.msra.mxu0 %vm440_vm9, %v948_v57 }
 0x1f6   :  { %2996 = vmatprep.subr.bf16.mxu0 %v3326_v0 }
 0x1f8   :  { %v946_v58 = vpop.permute.xlu1 %945 }
 0x1f9   :  { %2832 = vmatmul.mubr.msk.f32.vlgmr.msra.gmra.mrb[6].mxu0 %vm440_vm9, %v946_v58 }
 0x1fa   :  { %2847 = vmatprep.mubr.msk.f32.mxu0 %vm3327_vm0, %v3328_v1 }
 0x1fc   :  { %v862_v26 = vpop.permute.xlu1 %861 }
 0x24c   :  { %v513_v59 = vpop.f32.mrb[2].mxu1 }
 0x24d   :  { %v2803_v60 = vpop.f32.mrb[3].mxu1  ;;  %v517_v61 = vsel %vm440_vm9, %v513_v59, -inf }
 0x24e   :  { %518 = vmax.xlane.f32.xlu0 %v517_v61 }
 0x264   :  { %604 = vrot.lane.b32.xlu0 %v361_v47, %s3329_s0 }
 0x2c4   :  { %v848_v62 = vpop.f32.mrb[4].mxu0 }
 0x2c5   :  { %v2823_v63 = vpop.f32.mrb[5].mxu0  ;;  %v852_v2 = vsel %vm440_vm9, %v848_v62, -inf }
 0x2c6   :  { %853 = vmax.xlane.f32.xlu0 %v852_v2 }
 0x2cc   :  { %v1019_v3 = vpop.f32.mrb[6].mxu0 }
 0x2cd   :  { %v2833_v4 = vpop.f32.mrb[7].mxu0  ;;  %v1023_v6 = vsel %vm440_vm9, %v1019_v3, -inf }
 0x2ce   :  { %1024 = vmax.xlane.f32.xlu1 %v1023_v6  ;;  %v161_v4 = vld [vmem:[%s3859_s9 + $0x8] sm:$0xff] }
 0x2db   :  { %v519_v7 = vpop.xlane.xlu0 %518 }
 0x2dc   :  { %v520_v8 = vsub.f32 %v513_v59, %v519_v7  ;;  %690 = vrot.lane.b32.xlu0 %v437_v52, %s3329_s0 }
 0x2de   :  { %v521_v10 = vmul.f32 1.442695, %v520_v8 }
 0x2df   :  { %v605_v13 = vpop.permute.xlu0 %604 }
 0x2e0   :  { %3072 = vpow2.f32 %v521_v10 }
 0x2ea   :  { %v3073_v11 = vpop.eup %3072 }
 0x2eb   :  { %2807 = vmatmul.mubr.msk.f32.vlgmr.msra.gmra.mrb[4].mxu1 %vm440_vm9, %v3073_v11  ;;  %v523_v40 = vsel %vm440_vm9, %v3073_v11, 0.0 }
 0x2ec   :  { %2810 = vmatpush3.xpose.msk.msra.mxu1 %vm440_vm9, %v605_v13  ;;  %2811 = vmatprep.mubr.msk.f32.mxu1 %vm3327_vm0, %v3328_v1 }
 0x2ed   :  { %2814 = vmatprep.subr.mxu1 %v3328_v1 }
 0x2ef   :  { %2812 = vmatmul.mubr.msk.f32.vlgmr.msra.gmra.mrb[6].mxu1 %vm440_vm9, %v603_v54  ;;  %v158_v54 = vld [vmem:[#allocation12 + $0x10] sm:$0xff] }
 0x2f0   :  { %2816 = vmatprep.mubr.msk.f32.mxu1 %vm3327_vm0, %v3328_v1  ;;  %v3640_v58 = vpack.c.bf16 %v159_v55, %v158_v54 }
 0x353   :  { %v854_v14 = vpop.xlane.xlu0 %853 }
 0x354   :  { %v855_v15 = vsub.f32 %v848_v62, %v854_v14 }
 0x356   :  { %v856_v23 = vmul.f32 1.442695, %v855_v15 }
 0x357   :  { %v691_v17 = vpop.permute.xlu0 %690 }
 0x358   :  { %2815 = vmatpush3.msra.mxu1 %v691_v17  ;;  %3074 = vpow2.f32 %v856_v23  ;;  %v166_v23 = vld [vmem:[#allocation15 + $0x10] sm:$0xff] }
 0x359   :  { %2824 = vmatprep.subr.mxu1 %v3328_v1 }
 0x35b   :  { %v1025_v27 = vpop.xlane.xlu1 %1024 }
 0x35c   :  { %v1026_v28 = vsub.f32 %v1019_v3, %v1025_v27  ;;  %v160_v3 = vld [vmem:[%s3859_s9] sm:$0xff]  ;;  %v3682_v27 = vld [vmem:[#allocation14] ss:$0 sm:$0xff] }
 0x35d   :  { %v3653_v6 = vpack.c.bf16 %v161_v4, %v160_v3 }
 0x35e   :  { %v1027_v31 = vmul.f32 1.442695, %v1026_v28 }
 0x362   :  { %v3075_v24 = vpop.eup %3074 }
 0x363   :  { %v858_v25 = vsel %vm440_vm9, %v3075_v24, 0.0 }
 0x3be   :  { %v595_v18 = vpop.f32.mrb[4].mxu1 }
 0x3bf   :  { %v2808_v19 = vpop.f32.mrb[5].mxu1 }
 0x3c0   :  { %v163_v19 = vld [vmem:[%s3859_s9 + $0x18] sm:$0xff] }
 0x3c2   :  { %v676_v20 = vpop.f32.mrb[6].mxu1 }
 0x3c3   :  { %v2813_v21 = vpop.f32.mrb[7].mxu1  ;;  %v680_v22 = vsel %vm440_vm9, %v676_v20, -inf }
 0x3c4   :  { %681 = vmax.xlane.f32.xlu1 %v680_v22  ;;  %v164_v21 = vld [vmem:[#allocation15] sm:$0xff]  ;;  %v165_v22 = vld [vmem:[#allocation15 + $0x8] sm:$0xff] }
 0x3d5   :  { %1032 = vrot.lane.b32.xlu1 %v437_v52, %s3331_s5  ;;  %v157_v52 = vld [vmem:[#allocation12 + $0x8] sm:$0xff] }
 0x3d6   :  { %v3637_v53 = vpack.c.bf16 %v157_v52, %v156_v51 }
 0x3d8   :  { %2998 = vmatpush3.bf16.msra.mxu0 %v3637_v53 }
 0x3d9   :  { %2999 = vmatprep.subr.bf16.mxu0 %v3326_v0 }
 0x3dc   :  { %3001 = vmatpush3.bf16.msra.mxu0 %v3640_v58 }
 0x3dd   :  { %3008 = vmatprep.subr.bf16.mxu0 %v3326_v0 }
 0x3f9   :  { %859 = vadd.xlane.f32.xlu1 %v858_v25  ;;  %v167_v25 = vld [vmem:[#allocation15 + $0x18] sm:$0xff] }
 0x451   :  { %v682_v29 = vpop.xlane.xlu1 %681 }
 0x452   :  { %v683_v30 = vsub.f32 %v676_v20, %v682_v29 }
 0x454   :  { %v684_v32 = vmul.f32 1.442695, %v683_v30 }
 0x455   :  { %v1033_v37 = vpop.permute.xlu1 %1032 }
 0x456   :  { %3076 = vpow2.f32 %v684_v32  ;;  %v1412_v32 = vld [vmem:[#allocation3 + $0x3] sm:$0x1] }
 0x457   :  { %3078 = vpow2.f32 %v1027_v31 }
 0x460   :  { %v3077_v33 = vpop.eup %3076 }
 0x461   :  { %2817 = vmatmul.mubr.msk.f32.vlgmr.msra.gmra.mrb[8].mxu1 %vm440_vm9, %v3077_v33  ;;  %v686_v34 = vsel %vm440_vm9, %v3077_v33, 0.0  ;;  %v3079_v36 = vpop.eup %3078  ;;  %v1413_v33 = vld [vmem:[#allocation3 + $0x5] sm:$0x1] }
 0x462   :  { %2825 = vmatpush3.msra.mxu1 %v862_v26  ;;  %687 = vadd.xlane.f32.xlu0 %v686_v34  ;;  %v1029_v38 = vsel %vm440_vm9, %v3079_v36, 0.0  ;;  %v3677_v26 = vpack.c.bf16 %v167_v25, %v166_v23  ;;  %v1427_v34 = vrot.slane %v1412_v32, 7 }
 0x463   :  { %2826 = vmatprep.mubr.msk.f32.mxu1 %vm3327_vm0, %v3328_v1  ;;  %2834 = vmatprep.subr.mxu1 %v3328_v1 }
 0x465   :  { %2827 = vmatmul.mubr.msk.f32.vlgmr.msra.gmra.mrb[10].mxu1 %vm440_vm9, %v3075_v24  ;;  %v3674_v24 = vpack.c.bf16 %v165_v22, %v164_v21 }
 0x466   :  { %2835 = vmatpush3.msra.mxu1 %v1033_v37  ;;  %1030 = vadd.xlane.f32.xlu0 %v1029_v38  ;;  %v1414_v37 = vld [vmem:[#allocation3 + $0x7] sm:$0x1]  ;;  %v1429_v38 = vrot.slane %v1413_v33, 6 }
 0x467   :  { %2836 = vmatprep.mubr.msk.f32.mxu1 %vm3327_vm0, %v3328_v1  ;;  %3002 = vmatprep.subr.bf16.mxu1 %v3326_v0 }
 0x469   :  { %2837 = vmatmul.mubr.msk.f32.vlgmr.msra.gmra.mrb[12].mxu1 %vm440_vm9, %v3079_v36  ;;  %v1411_v36 = vld [vmem:[#allocation3 + $0x1] sm:$0x1] }
 0x46a   :  { %524 = vadd.xlane.f32.xlu0 %v523_v40  ;;  %2858 = vmatprep.mubr.msk.f32.mxu1 %vm3327_vm0, %v3328_v1  ;;  %v1428_v40 = vsel %vm195_vm1, %v1427_v34, %v1411_v36 }
 0x46b   :  { %3004 = vmatpush3.bf16.msra.mxu1 %v3653_v6 }
 0x46c   :  { %3005 = vmatprep.subr.bf16.mxu1 %v3326_v0 }
 0x486   :  { %v860_v49 = vpop.xlane.xlu1 %859 }
 0x4ef   :  { %v688_v44 = vpop.xlane.xlu0 %687 }
 0x4f3   :  { %v1031_v45 = vpop.xlane.xlu0 %1030 }
 0x4f7   :  { %v525_v46 = vpop.xlane.xlu0 %524 }
 0x4f8   :  { %3080 = vrcp.f32 %v525_v46 }
 0x4f9   :  { %3082 = vrcp.f32 %v688_v44  ;;  %v1431_v44 = vrot.slane %v1414_v37, 5 }
 0x4fa   :  { %3084 = vrcp.f32 %v860_v49  ;;  %v1418_v49 = vld [vmem:[#allocation3 + $0xf] sm:$0x1] }
 0x4fb   :  { %3086 = vrcp.f32 %v1031_v45  ;;  %v1430_v45 = vsel %vm198_vm2, %v1429_v38, %v1428_v40  ;;  %v1439_v55 = vrot.slane %v1418_v49, 1 }
 0x502   :  { %v3081_v47 = vpop.eup %3080 }
 0x503   :  { %v600_v48 = vmul.f32 %v3081_v47, %v595_v18  ;;  %v3083_v56 = vpop.eup %3082  ;;  %v162_v18 = vld [vmem:[%s3859_s9 + $0x10] sm:$0xff]  ;;  %s3335_s9 = smov [#allocation17]  }
 0x504   :  { %v3085_v61 = vpop.eup %3084  ;;  %v3670_v20 = vpack.c.bf16 %v163_v19, %v162_v18  ;;  %v1417_v47 = vld [vmem:[#allocation3 + $0xd] sm:$0x1] }
 0x505   :  { %601 = vst.msk [vmem:[#allocation2] sm:$0xff] %vm440_vm9, %v600_v48  ;;  %v3087_v7 = vpop.eup %3086  ;;  %v1432_v48 = vsel %vm201_vm3, %v1431_v44, %v1430_v45  ;;  %v1437_v52 = vrot.slane %v1417_v47, 2 }
 0x506   :  { %3007 = vmatpush3.bf16.msra.mxu1 %v3670_v20 }
 0x507   :  { %3014 = vmatprep.subr.bf16.mxu1 %v3326_v0 }
 0x534   :  { %v762_v57 = vpop.f32.mrb[8].mxu1 }
 0x535   :  { %v767_v59 = vmul.f32 %v3083_v56, %v762_v57  ;;  %v2818_v60 = vpop.f32.mrb[9].mxu1 }
 0x537   :  { %769 = vrot.lane.b32.xlu1 %v767_v59, %s3316_s28 }
 0x538   :  { %v933_v62 = vpop.f32.mrb[10].mxu1 }
 0x539   :  { %v938_v63 = vmul.f32 %v3085_v61, %v933_v62  ;;  %v2828_v2 = vpop.f32.mrb[11].mxu1  ;;  %v1349_v62 = vlaneseq }
 0x53b   :  { %940 = vrot.lane.b32.xlu0 %v938_v63, %s3332_s26  ;;  %v1350_v2 = vshrl.u32 %v1349_v62, 7 }
 0x53c   :  { %v1104_v8 = vpop.f32.mrb[12].mxu1 }
 0x53d   :  { %v1109_v10 = vmul.f32 %v3087_v7, %v1104_v8  ;;  %v2838_v11 = vpop.f32.mrb[13].mxu1 }
 0x53f   :  { %1111 = vrot.lane.b32.xlu1 %v1109_v10, %s3333_s6 }
 0x5a9   :  { %v770_v13 = vpop.permute.xlu1 %769 }
 0x5aa   :  { %773 = vst.msk [vmem:[#allocation2] sm:$0xff] %vm772_vm10, %v770_v13 }
 0x5ad   :  { %v941_v14 = vpop.permute.xlu0 %940 }
 0x5ae   :  { %944 = vst.msk [vmem:[#allocation2] sm:$0xff] %vm943_vm11, %v941_v14 }
 0x5b1   :  { %v1112_v15 = vpop.permute.xlu1 %1111 }
 0x5b2   :  { %1115 = vst.msk [vmem:[#allocation2] sm:$0xff] %vm1114_vm12, %v1112_v15 }
 0x5b9   :  { %v1116_v17 = vld [vmem:[#allocation2] sm:$0xff] }
 0x5ba   :  { %2848 = vmatmul.mubr.msk.f32.vlgmr.msra.gmra.mrb[8].mxu0 %vm215_vm8, %v1116_v17 }
 0x5bb   :  { %2869 = vmatprep.mubr.msk.f32.mxu0 %vm3327_vm0, %v3328_v1  ;;  %3010 = vmatpush3.bf16.msra.mxu0 %v3674_v24 }
 0x5bc   :  { %3011 = vmatprep.subr.bf16.mxu0 %v3326_v0 }
 0x5bf   :  { %3013 = vmatpush3.bf16.msra.mxu0 %v3677_v26 }
 0x5c0   :  { %3020 = vmatprep.subr.bf16.mxu0 %v3326_v0 }
 0x68d   :  { %v1192_v28 = vpop.f32.mrb[8].mxu0 }
 0x68e   :  { %v1193_v29 = vadd.f32 %v3682_v27, %v1192_v28  ;;  %v2849_v30 = vpop.f32.mrb[9].mxu0 }
 0x690   :  { %v1197_v31 = vadd.f32 %v1193_v29, %v3546_v35  ;;  %v1415_v35 = vld [vmem:[#allocation3 + $0x9] sm:$0x1] }
 0x691   :  { %v1433_v46 = vrot.slane %v1415_v35, 4 }
 0x692   :  { %2859 = vmatmul.mubr.msk.f32.vlgmr.msra.gmra.mrb[14].mxu1 %vm215_vm8, %v1197_v31 }
 0x693   :  { %3016 = vmatpush3.bf16.msra.mxu1 %v3523_v5  ;;  %2880 = vmatprep.mubr.msk.f32.mxu1 %vm3327_vm0, %v3328_v1  ;;  %v1416_v5 = vld [vmem:[#allocation3 + $0xb] sm:$0x1]  ;;  %v1434_v51 = vsel %vm204_vm4, %v1433_v46, %v1432_v48 }
 0x694   :  { %3017 = vmatprep.subr.bf16.mxu1 %v3326_v0 }
 0x697   :  { %3019 = vmatpush3.bf16.msra.mxu1 %v3528_v12  ;;  %v1435_v12 = vrot.slane %v1416_v5, 3 }
 0x698   :  { %3026 = vmatprep.subr.bf16.mxu1 %v3326_v0 }
 0x699   :  { %v1436_v54 = vsel %vm207_vm5, %v1435_v12, %v1434_v51 }
 0x69a   :  { %v1438_v56 = vsel %vm210_vm6, %v1437_v52, %v1436_v54 }
 0x69b   :  { %v3700_v57 = vsel %vm213_vm7, %v1439_v55, %v1438_v56 }
 0x69c   :  { %2881 = vmatmul.mubr.msk.f32.vlgmr.msra.gmra.mrb[16].mxu1 %vm215_vm8, %v3700_v57 }
 0x69d   :  { %3028 = vmatpush3.bf16.msra.mxu1 %v3556_v39  ;;  %2902 = vmatprep.mubr.msk.f32.mxu1 %vm3327_vm0, %v3328_v1 }
 0x69e   :  { %3029 = vmatprep.subr.bf16.mxu1 %v3326_v0 }
 0x6a1   :  { %3031 = vmatpush3.bf16.msra.mxu1 %v3559_v41 }
 0x6a2   :  { %2910 = vmatprep.subr.mxu1 %v3328_v1 }
 0x6a4   :  { %2903 = vmatmul.mubr.msk.f32.vlgmr.msra.gmra.mrb[18].mxu1 %vm215_vm8, %v3700_v57 }
 0x6a5   :  { %2912 = vmatprep.mubr.msk.f32.mxu1 %vm3327_vm0, %v3328_v1 }
 0x765   :  { %v1267_v59 = vpop.f32.mrb[14].mxu1 }
 0x766   :  { %v2860_v60 = vpop.f32.mrb[15].mxu1  ;;  %2870 = vmatmul.mubr.msk.f32.vlgmr.msra.gmra.mrb[10].mxu0 %vm215_vm8, %v1267_v59 }
 0x767   :  { %3022 = vmatpush3.bf16.msra.mxu0 %v3525_v9  ;;  %2891 = vmatprep.mubr.msk.f32.mxu0 %vm3327_vm0, %v3328_v1  ;;  %v3334_v9 = vmov 1966171168  }
 0x768   :  { %3023 = vmatprep.subr.bf16.mxu0 %v3326_v0 }
 0x76b   :  { %3025 = vmatpush3.bf16.msra.mxu0 %v3532_v16  ;;  %v1347_v16 = vunpack.c.l.s4 %v3334_v9 }
 0x76c   :  { %2905 = vmatprep.subr.mxu0 %v3328_v1 }
 0x76d   :  { %v1348_v63 = vunpack.c.0.s8 %v1347_v16 }
 0x76e   :  { %2892 = vmatmul.mubr.msk.f32.vlgmr.msra.gmra.mrb[12].mxu0 %vm215_vm8, %v3700_v57 }
 0x76f   :  { %2907 = vmatprep.mubr.msk.f32.mxu0 %vm3327_vm0, %v3328_v1  ;;  %v1509_v39 = vpop.f32.mrb[16].mxu1  ;;  %v3729_v3 = vsub.s32 %v1348_v63, %v1350_v2 }
 0x770   :  { %v1510_v41 = vadd.f32 %v3571_v42, %v1509_v39  ;;  %v2882_v61 = vpop.f32.mrb[17].mxu1 }
 0x772   :  { %1814 = vrot.lane.b32.xlu0 %v1510_v41, %s3329_s0 }
 0x776   :  { %1985 = vrot.lane.b32.xlu0 %v1510_v41, %s3330_s4 }
 0x77a   :  { %2155 = vrot.lane.b32.xlu0 %v1510_v41, %s3331_s5 }
 0x7e4   :  { %v1815_v33 = vpop.permute.xlu0 %1814 }
 0x7e8   :  { %v1986_v37 = vpop.permute.xlu0 %1985 }
 0x7ec   :  { %v2156_v38 = vpop.permute.xlu0 %2155 }
 0x839   :  { %v1340_v4 = vpop.f32.mrb[10].mxu0 }
 0x83a   :  { %v1341_v7 = vadd.f32 %v1340_v4, %v1197_v31  ;;  %v2871_v8 = vpop.f32.mrb[11].mxu0 }
 0x83c   :  { %v1345_v10 = vcombine.high %v1341_v7, %v1341_v7  ;;  %v1352_v42 = vrot.slane %v1341_v7, %v3729_v3 }
 0x83e   :  { %v1359_v11 = vrot.slane %v1345_v10, %v3729_v3  ;;  %v1360_v13 = vcombine.high %v1352_v42, %v1352_v42  ;;  %v1368_v14 = vrot.slane %v1352_v42, %v3729_v3 }
 0x840   :  { %v1361_v15 = vcombine.high %v1359_v11, %v1359_v11  ;;  %v1375_v17 = vrot.slane %v1359_v11, %v3729_v3  ;;  %v1382_v18 = vrot.slane %v1360_v13, %v3729_v3  ;;  %v1390_v19 = vcombine.high %v1368_v14, %v1368_v14  ;;  %1403 = vst.msk [vmem:[#allocation17] sm:$0x1] %vm1402_vm13, %v1368_v14 }
 0x841   :  { %v1579_v21 = vpop.f32.mrb[12].mxu0 }
 0x842   :  { %v1389_v22 = vrot.slane %v1361_v15, %v3729_v3  ;;  %v1391_v23 = vcombine.high %v1375_v17, %v1375_v17  ;;  %v1392_v25 = vcombine.high %v1382_v18, %v1382_v18  ;;  %1404 = vst.msk [vmem:[#allocation17 + $0x2] sm:$0x1] %vm1402_vm13, %v1382_v18  ;;  %1405 = vst.msk [vmem:[#allocation17 + $0x4] sm:$0x1] %vm1402_vm13, %v1390_v19  ;;  %v2893_v29 = vpop.f32.mrb[13].mxu0 }
 0x843   :  { %1407 = vst.msk [vmem:[#allocation17 + $0x8] sm:$0x1] %vm1402_vm13, %v1375_v17  ;;  %v1580_v28 = vadd.f32 %v3576_v43, %v1579_v21  ;;  %v1649_v43 = vpop.f32.mrb[18].mxu1 }
 0x844   :  { %v1393_v30 = vcombine.high %v1389_v22, %v1389_v22  ;;  %1406 = vst.msk [vmem:[#allocation17 + $0x6] sm:$0x1] %vm1402_vm13, %v1392_v25  ;;  %1408 = vst.msk [vmem:[#allocation17 + $0xa] sm:$0x1] %vm1402_vm13, %v1389_v22  ;;  %v1650_v31 = vadd.f32 %v3590_v50, %v1649_v43  ;;  %v2904_v32 = vpop.f32.mrb[19].mxu1 }
 0x845   :  { %1409 = vst.msk [vmem:[#allocation17 + $0xc] sm:$0x1] %vm1402_vm13, %v1391_v23  ;;  %1816 = vrot.lane.b32.xlu1 %v1580_v28, %s3329_s0  ;;  %2906 = vmatpush3.xpose.msk.msra.mxu0 %vm440_vm9, %v1580_v28 }
 0x846   :  { %2915 = vmatprep.subr.mxu0 %v3328_v1  ;;  %1410 = vst.msk [vmem:[#allocation17 + $0xe] sm:$0x1] %vm1402_vm13, %v1393_v30  ;;  %2911 = vmatpush3.msra.mxu1 %v1650_v31 }
 0x847   :  { %2920 = vmatprep.subr.mxu1 %v3328_v1 }
 0x848   :  { %2908 = vmatmul.mubr.msk.f32.vlgmr.msra.gmra.mrb[14].mxu0 %vm440_vm9, %v1510_v41 }
 0x849   :  { %1987 = vrot.lane.b32.xlu1 %v1580_v28, %s3330_s4  ;;  %2917 = vmatprep.mubr.msk.f32.mxu0 %vm3327_vm0, %v3328_v1 }
 0x84d   :  { %2157 = vrot.lane.b32.xlu1 %v1580_v28, %s3331_s5 }
 0x8b7   :  { %v1817_v34 = vpop.permute.xlu1 %1816 }
 0x8b8   :  { %2916 = vmatpush3.xpose.msk.msra.mxu0 %vm440_vm9, %v1817_v34 }
 0x8b9   :  { %2925 = vmatprep.subr.mxu0 %v3328_v1 }
 0x8bb   :  { %v1988_v36 = vpop.permute.xlu1 %1987  ;;  %2918 = vmatmul.mubr.msk.f32.vlgmr.msra.gmra.mrb[16].mxu0 %vm440_vm9, %v1815_v33 }
 0x8bc   :  { %2926 = vmatpush3.xpose.msk.msra.mxu0 %vm440_vm9, %v1988_v36  ;;  %2927 = vmatprep.mubr.msk.f32.mxu0 %vm3327_vm0, %v3328_v1 }
 0x8bd   :  { %2935 = vmatprep.subr.mxu0 %v3328_v1 }
 0x8bf   :  { %v2158_v50 = vpop.permute.xlu1 %2157  ;;  %2928 = vmatmul.mubr.msk.f32.vlgmr.msra.gmra.mrb[18].mxu0 %vm440_vm9, %v1986_v37 }
 0x8c0   :  { %2936 = vmatpush3.xpose.msk.msra.mxu0 %vm440_vm9, %v2158_v50  ;;  %2937 = vmatprep.mubr.msk.f32.mxu0 %vm3327_vm0, %v3328_v1 }
 0x8c1   :  { %3032 = vmatprep.subr.bf16.mxu0 %v3326_v0 }
 0x8c3   :  { %2938 = vmatmul.mubr.msk.f32.vlgmr.msra.gmra.mrb[20].mxu0 %vm440_vm9, %v2156_v38 }
 0x8c4   :  { %3034 = vmatpush3.bf16.msra.mxu0 %v3637_v53  ;;  %2953 = vmatprep.mubr.msk.f32.mxu0 %vm3327_vm0, %v3328_v1 }
 0x8c5   :  { %3035 = vmatprep.subr.bf16.mxu0 %v3326_v0 }
 0x8c8   :  { %3037 = vmatpush3.bf16.msra.mxu0 %v3640_v58 }
 0x8c9   :  { %3044 = vmatprep.subr.bf16.mxu0 %v3326_v0 }
 0x91b   :  { %v1725_v35 = vpop.f32.mrb[14].mxu0 }
 0x91c   :  { %v2909_v40 = vpop.f32.mrb[15].mxu0  ;;  %v1729_v44 = vsel %vm440_vm9, %v1725_v35, -inf }
 0x91d   :  { %1730 = vmax.xlane.f32.xlu1 %v1729_v44 }
 0x92e   :  { %2072 = vrot.lane.b32.xlu1 %v1650_v31, %s3330_s4 }
 0x98e   :  { %v1888_v5 = vpop.f32.mrb[16].mxu0 }
 0x98f   :  { %v2919_v45 = vpop.f32.mrb[17].mxu0  ;;  %v1892_v53 = vsel %vm440_vm9, %v1888_v5, -inf }
 0x990   :  { %1893 = vmax.xlane.f32.xlu0 %v1892_v53 }
 0x992   :  { %v2059_v46 = vpop.f32.mrb[18].mxu0 }
 0x993   :  { %v2929_v47 = vpop.f32.mrb[19].mxu0  ;;  %v2063_v48 = vsel %vm440_vm9, %v2059_v46, -inf }
 0x994   :  { %2064 = vmax.xlane.f32.xlu0 %v2063_v48 }
 0x996   :  { %v2229_v58 = vpop.f32.mrb[20].mxu0 }
 0x997   :  { %v2939_v12 = vpop.f32.mrb[21].mxu0  ;;  %v2233_v49 = vsel %vm440_vm9, %v2229_v58, -inf }
 0x998   :  { %2234 = vmax.xlane.f32.xlu1 %v2233_v49 }
 0x9a9   :  { %2242 = vrot.lane.b32.xlu1 %v1650_v31, %s3331_s5 }
 0x9aa   :  { %v1731_v51 = vpop.xlane.xlu1 %1730  ;;  %1902 = vrot.lane.b32.xlu0 %v1650_v31, %s3329_s0 }
 0x9ab   :  { %v1732_v52 = vsub.f32 %v1725_v35, %v1731_v51 }
 0x9ad   :  { %v1733_v54 = vmul.f32 1.442695, %v1732_v52 }
 0x9ae   :  { %v2073_v39 = vpop.permute.xlu1 %2072 }
 0x9af   :  { %3088 = vpow2.f32 %v1733_v54 }
 0x9b9   :  { %v3089_v55 = vpop.eup %3088 }
 0x9ba   :  { %2913 = vmatmul.mubr.msk.f32.vlgmr.msra.gmra.mrb[20].mxu1 %vm440_vm9, %v3089_v55  ;;  %v1735_v14 = vsel %vm440_vm9, %v3089_v55, 0.0 }
 0x9bb   :  { %2922 = vmatprep.mubr.msk.f32.mxu1 %vm3327_vm0, %v3328_v1 }
 0xa1d   :  { %v1894_v56 = vpop.xlane.xlu0 %1893 }
 0xa1e   :  { %v1895_v59 = vsub.f32 %v1888_v5, %v1894_v56 }
 0xa20   :  { %v1896_v60 = vmul.f32 1.442695, %v1895_v59 }
 0xa21   :  { %v2065_v41 = vpop.xlane.xlu0 %2064 }
 0xa22   :  { %3090 = vpow2.f32 %v1896_v60  ;;  %v2066_v61 = vsub.f32 %v2059_v46, %v2065_v41 }
 0xa24   :  { %v2067_v9 = vmul.f32 1.442695, %v2066_v61 }
 0xa25   :  { %v1903_v16 = vpop.permute.xlu0 %1902  ;;  %v2235_v62 = vpop.xlane.xlu1 %2234 }
 0xa26   :  { %3092 = vpow2.f32 %v2067_v9  ;;  %v2236_v63 = vsub.f32 %v2229_v58, %v2235_v62  ;;  %2921 = vmatpush3.msra.mxu1 %v1903_v16 }
 0xa27   :  { %2930 = vmatprep.subr.mxu1 %v3328_v1 }
 0xa28   :  { %v2237_v2 = vmul.f32 1.442695, %v2236_v63 }
 0xa29   :  { %v2243_v10 = vpop.permute.xlu1 %2242 }
 0xa2a   :  { %3094 = vpow2.f32 %v2237_v2 }
 0xa2c   :  { %v3091_v4 = vpop.eup %3090 }
 0xa2d   :  { %2923 = vmatmul.mubr.msk.f32.vlgmr.msra.gmra.mrb[22].mxu1 %vm440_vm9, %v3091_v4  ;;  %v1898_v7 = vsel %vm440_vm9, %v3091_v4, 0.0 }
 0xa2e   :  { %2931 = vmatpush3.msra.mxu1 %v2073_v39  ;;  %1899 = vadd.xlane.f32.xlu0 %v1898_v7 }
 0xa2f   :  { %2932 = vmatprep.mubr.msk.f32.mxu1 %vm3327_vm0, %v3328_v1  ;;  %2940 = vmatprep.subr.mxu1 %v3328_v1 }
 0xa30   :  { %v3093_v8 = vpop.eup %3092 }
 0xa31   :  { %2933 = vmatmul.mubr.msk.f32.vlgmr.msra.gmra.mrb[24].mxu1 %vm440_vm9, %v3093_v8  ;;  %v2069_v42 = vsel %vm440_vm9, %v3093_v8, 0.0 }
 0xa32   :  { %2941 = vmatpush3.msra.mxu1 %v2243_v10  ;;  %2070 = vadd.xlane.f32.xlu1 %v2069_v42 }
 0xa33   :  { %2942 = vmatprep.mubr.msk.f32.mxu1 %vm3327_vm0, %v3328_v1  ;;  %3038 = vmatprep.subr.bf16.mxu1 %v3326_v0 }
 0xa34   :  { %v3095_v11 = vpop.eup %3094 }
 0xa35   :  { %2943 = vmatmul.mubr.msk.f32.vlgmr.msra.gmra.mrb[26].mxu1 %vm440_vm9, %v3095_v11  ;;  %v2239_v13 = vsel %vm440_vm9, %v3095_v11, 0.0 }
 0xa36   :  { %2240 = vadd.xlane.f32.xlu0 %v2239_v13  ;;  %3040 = vmatpush3.bf16.msra.mxu1 %v3653_v6 }
 0xa37   :  { %3041 = vmatprep.subr.bf16.mxu1 %v3326_v0  ;;  %2964 = vmatprep.mubr.msk.f32.mxu1 %vm3327_vm0, %v3328_v1 }
 0xa3a   :  { %1736 = vadd.xlane.f32.xlu0 %v1735_v14  ;;  %3043 = vmatpush3.bf16.msra.mxu1 %v3670_v20 }
 0xa8d   :  { %v1807_v15 = vpop.f32.mrb[20].mxu1 }
 0xa8e   :  { %v2914_v17 = vpop.f32.mrb[21].mxu1 }
 0xabb   :  { %v1900_v18 = vpop.xlane.xlu0 %1899 }
 0xabf   :  { %v2071_v6 = vpop.xlane.xlu1 %2070 }
 0xac3   :  { %v2241_v19 = vpop.xlane.xlu0 %2240 }
 0xac7   :  { %v1737_v21 = vpop.xlane.xlu0 %1736 }
 0xac8   :  { %3096 = vrcp.f32 %v1737_v21 }
 0xac9   :  { %3098 = vrcp.f32 %v1900_v18 }
 0xaca   :  { %3100 = vrcp.f32 %v2071_v6 }
 0xacb   :  { %3102 = vrcp.f32 %v2241_v19 }
 0xad2   :  { %v3097_v22 = vpop.eup %3096 }
 0xad3   :  { %v1812_v23 = vmul.f32 %v3097_v22, %v1807_v15  ;;  %v3099_v25 = vpop.eup %3098 }
 0xad4   :  { %v3101_v20 = vpop.eup %3100 }
 0xad5   :  { %1813 = vst.msk [vmem:[#allocation2] sm:$0xff] %vm440_vm9, %v1812_v23  ;;  %v3103_v33 = vpop.eup %3102 }
 0xb00   :  { %v1974_v28 = vpop.f32.mrb[22].mxu1 }
 0xb01   :  { %v1979_v29 = vmul.f32 %v3099_v25, %v1974_v28  ;;  %v2924_v30 = vpop.f32.mrb[23].mxu1 }
 0xb03   :  { %1981 = vrot.lane.b32.xlu1 %v1979_v29, %s3316_s28  ;;  %s2618_s28 = sshll.u32 %s3335_s9, 4  ;;  %s2619_s28 = int_to_ptr.vmem [resolvable:$true] %s2618_s28 }
 0xb04   :  { %v2144_v43 = vpop.f32.mrb[24].mxu1  ;;  %s3280_s16 = scalar_lea.vmem %s2619_s28, 256  ;;  %p3285_p9 = scmp.lt.s32.totalorder %s2619_s28, %s2619_s28 }
 0xb05   :  { %v2149_v31 = vmul.f32 %v3101_v20, %v2144_v43  ;;  %v2934_v32 = vpop.f32.mrb[25].mxu1  ;;  %p3281_p8 = scmp.ne.s32.totalorder %s2619_s28, %s3280_s16  ;;  %p3286_p10 = scmp.lt.s32.totalorder %s3280_s16, %s3280_s16 }
 0xb07   :  { %2151 = vrot.lane.b32.xlu0 %v2149_v31, %s3332_s26  ;;  %p3287_p11 = por %p3286_p10, %p3285_p9 }
 0xb08   :  { %v2314_v34 = vpop.f32.mrb[26].mxu1 }
 0xb09   :  { %v2319_v36 = vmul.f32 %v3103_v33, %v2314_v34  ;;  %v2944_v37 = vpop.f32.mrb[27].mxu1  ;;  %p3288_p12 = pnand %p3287_p11, %p3281_p8 }
 0xb0b   :  { %2321 = vrot.lane.b32.xlu1 %v2319_v36, %s3333_s6 }
 0xb75   :  { %v1982_v50 = vpop.permute.xlu1 %1981 }
 0xb76   :  { %1984 = vst.msk [vmem:[#allocation2] sm:$0xff] %vm772_vm10, %v1982_v50 }
 0xb79   :  { %v2152_v38 = vpop.permute.xlu0 %2151 }
 0xb7a   :  { %2154 = vst.msk [vmem:[#allocation2] sm:$0xff] %vm943_vm11, %v2152_v38 }
 0xb7d   :  { %v2322_v35 = vpop.permute.xlu1 %2321 }
 0xb7e   :  { %2324 = vst.msk [vmem:[#allocation2] sm:$0xff] %vm1114_vm12, %v2322_v35 }
 0xb85   :  { %v2325_v40 = vld [vmem:[#allocation2] sm:$0xff] }
 0xb86   :  { %2954 = vmatmul.mubr.msk.f32.vlgmr.msra.gmra.mrb[22].mxu0 %vm215_vm8, %v2325_v40 }
 0xb87   :  { %3046 = vmatpush3.bf16.msra.mxu0 %v3674_v24  ;;  %2975 = vmatprep.mubr.msk.f32.mxu0 %vm3327_vm0, %v3328_v1 }
 0xb88   :  { %3047 = vmatprep.subr.bf16.mxu0 %v3326_v0 }
 0xb8b   :  { %3049 = vmatpush3.bf16.msra.mxu0 %v3677_v26 }
 0xc59   :  { %v2395_v44 = vpop.f32.mrb[22].mxu0 }
 0xc5a   :  { %v2396_v5 = vadd.f32 %v3682_v27, %v2395_v44  ;;  %v2955_v45 = vpop.f32.mrb[23].mxu0 }
 0xc5c   :  { %v2400_v53 = vadd.f32 %v2396_v5, %v3700_v57 }
 0xc5e   :  { %2965 = vmatmul.mubr.msk.f32.vlgmr.msra.gmra.mrb[28].mxu1 %vm215_vm8, %v2400_v53 }
 0xd31   :  { %v2470_v46 = vpop.f32.mrb[28].mxu1 }
 0xd32   :  { %v2966_v47 = vpop.f32.mrb[29].mxu1  ;;  %2976 = vmatmul.mubr.msk.f32.vlgmr.msra.gmra.mrb[24].mxu0 %vm215_vm8, %v2470_v46 }
 0xe05   :  { %v2543_v24 = vpop.f32.mrb[24].mxu0 }
 0xe06   :  { %v2544_v48 = vadd.f32 %v2543_v24, %v2400_v53  ;;  %v2977_v58 = vpop.f32.mrb[25].mxu0 }
 0xe08   :  { %v2548_v1 = vcombine.high %v2544_v48, %v2544_v48  ;;  %v2555_v0 = vrot.slane %v2544_v48, %v3729_v3 }
 0xe0a   :  { %v2562_v26 = vrot.slane %v2548_v1, %v3729_v3  ;;  %v2563_v12 = vcombine.high %v2555_v0, %v2555_v0  ;;  %v2571_v27 = vrot.slane %v2555_v0, %v3729_v3 }
 0xe0c   :  { %v2564_v49 = vcombine.high %v2562_v26, %v2562_v26  ;;  %v2578_v57 = vrot.slane %v2562_v26, %v3729_v3  ;;  %v2585_v51 = vrot.slane %v2563_v12, %v3729_v3  ;;  %v2593_v52 = vcombine.high %v2571_v27, %v2571_v27  ;;  %2605 = vst.msk [vmem:[#allocation17 + $0x1] sm:$0x1] %vm1402_vm13, %v2571_v27 }
 0xe0e   :  { %v2592_v54 = vrot.slane %v2564_v49, %v3729_v3  ;;  %v2594_v55 = vcombine.high %v2578_v57, %v2578_v57  ;;  %v2595_v56 = vcombine.high %v2585_v51, %v2585_v51  ;;  %2606 = vst.msk [vmem:[#allocation17 + $0x3] sm:$0x1] %vm1402_vm13, %v2585_v51  ;;  %2607 = vst.msk [vmem:[#allocation17 + $0x5] sm:$0x1] %vm1402_vm13, %v2593_v52 }
 0xe0f   :  { %2609 = vst.msk [vmem:[#allocation17 + $0x9] sm:$0x1] %vm1402_vm13, %v2578_v57 }
 0xe10   :  { %v2596_v59 = vcombine.high %v2592_v54, %v2592_v54  ;;  %2608 = vst.msk [vmem:[#allocation17 + $0x7] sm:$0x1] %vm1402_vm13, %v2595_v56  ;;  %2610 = vst.msk [vmem:[#allocation17 + $0xb] sm:$0x1] %vm1402_vm13, %v2592_v54 }
 0xe11   :  { %2611 = vst.msk [vmem:[#allocation17 + $0xd] sm:$0x1] %vm1402_vm13, %v2594_v55 }
 0xe12   :  { %2612 = vst.msk [vmem:[#allocation17 + $0xf] sm:$0x1] %vm1402_vm13, %v2596_v59 }
 0xe13   :  { %3291 = shalt.err (!%p3288_p12)
}
 0xe14   :  { %s3292_s2 = scalar_lea.hbm %s3861_s11, 256 }
 0xe15   :  { %p3293_p13 = scmp.ne.s32.totalorder %s3861_s11, %s3292_s2  ;;  %p3296_p0 = scmp.lt.u32.totalorder %s3292_s2, %s3861_s11 }
 0xe17   :  { %p3298_p1 = pnand %p3296_p0, %p3293_p13 }
 0xe19   :  { %3301 = shalt.err (!%p3298_p1)
}
 0xe1a   :  { %2624 = dma.vmem_to_hbm [thread:$0]  %s2619_s28, 256, %s3861_s11, [#allocation5], %s3320_s7, %s3320_s7, %s3321_s15  }
 0xe1b   :  { %3312 = dma.done.wait [#allocation5], 256  }
 0xe1c   :  { %3313 = vsyncadd [#allocation5], 4294967040 }
 0xe1d   :  { %2628 = vsyncpa [#allocation4], 1 }
 0xe1e   :  { %2629 = vsyncpa [#allocation7], 1 }
 0xe1f   :  { %2630 = vsyncpa [#allocation10], 1 }
 0xe20   :  { %2631 = vsyncpa [#allocation13], 1 }
 0xe21   :  { %2632 = vsyncpa [#allocation16], 1 }
 0xe22   :  { %2633 = vsyncpa [#allocation5], 1 }

</bundles_post_ra>
